<compile_context>
chip_gen: v7x
topology: tpu7x:2x2x1
jax: 0.10.0
libtpu: 0.0.40
codegen_flags: <defaults>
</compile_context>

<pallas_src>
import functools
import math

import jax
import jax.numpy as jnp
from jax.experimental import pallas as pl
from jax.experimental.pallas import tpu as pltpu

_SQRT_HALF = 1.0 / math.sqrt(2.0)
_GELU_C = math.sqrt(2.0 / math.pi)


def _gelu_tanh(z):
    # tanh-approximate GELU: tanh lands on the EUP slot (VPU relief).  Differs from the
    # exact erf GELU of nn.GELU() by <~3e-3 abs, well inside the bf16-matmul tolerance.
    return 0.5 * z * (1.0 + jnp.tanh(_GELU_C * (z + 0.044715 * z * z * z)))


def _attn_adapter_kernel(x_ref, wqkv_ref, bqkv_ref, dwqkv_ref, dbqkv_ref,
                         uwqkv_ref, ubqkv_ref, wo_ref, bo_ref, dwo_ref,
                         dbo_ref, cwo_ref, uwo_ref, ubo_ref, o_ref, *,
                         num_heads, head_dim, embed_dim):
    """One grid step = one batch element.  bf16 MXU inputs, f32 accumulation."""
    E, H, Dh = embed_dim, num_heads, head_dim
    S = x_ref.shape[1]

    x = x_ref[0].astype(jnp.float32)          # (S, E)
    x_bf = x.astype(jnp.bfloat16)

    # ---- fused q/k/v projection: one (S,E)x(E,3E) matmul (attn scale folded in q). ----
    qkv = jnp.dot(x_bf, wqkv_ref[...], preferred_element_type=jnp.float32) + bqkv_ref[...]

    # ---- fused q/k/v adapters: shared LN stats of x (per-branch gamma/beta folded into
    #      the down proj at pack time), one down matmul, GELU, block-diag up matmul. ----
    mu = jnp.mean(x, axis=-1, keepdims=True)
    var = jnp.mean((x - mu) ** 2, axis=-1, keepdims=True)
    xhat = ((x - mu) * jax.lax.rsqrt(var + 1e-5)).astype(jnp.bfloat16)
    d = jnp.dot(xhat, dwqkv_ref[...], preferred_element_type=jnp.float32) + dbqkv_ref[...]
    d = _gelu_tanh(d).astype(jnp.bfloat16)
    qkv = qkv + jnp.dot(d, uwqkv_ref[...], preferred_element_type=jnp.float32) + ubqkv_ref[...]

    q_all = qkv[:, 0 * E:1 * E].astype(jnp.bfloat16)
    k_all = qkv[:, 1 * E:2 * E].astype(jnp.bfloat16)
    v_all = qkv[:, 2 * E:3 * E].astype(jnp.bfloat16)

    # ---- per-head attention; head context is folded straight into the output
    #      projection and the out-adapter down projection (no concat buffer). ----
    Bp = dwo_ref.shape[1]
    o_acc = jnp.zeros((S, E), jnp.float32)       # attn_out @ Wo
    a_acc = jnp.zeros((S, Bp), jnp.float32)      # attn_out @ Wd(out adapter)
    row_sum = jnp.zeros((S, 1), jnp.float32)     # sum_E attn_out      (for LN mean)
    row_sq = jnp.zeros((S, 1), jnp.float32)      # sum_E attn_out^2    (for LN var)
    for h in range(H):                           # static loop: H is small & fixed
        lo = h * Dh
        qh = q_all[:, lo:lo + Dh]
        kh = k_all[:, lo:lo + Dh]
        vh = v_all[:, lo:lo + Dh]
        # q @ k^T without an explicit transpose (MXU-native dimension numbers).
        s = jax.lax.dot_general(qh, kh, (((1,), (1,)), ((), ())),
                                preferred_element_type=jnp.float32)   # (S, S)
        s = s - jnp.max(s, axis=-1, keepdims=True)
        p = jnp.exp(s)                                                # unnormalized
        inv = pl.reciprocal(jnp.sum(p, axis=-1, keepdims=True), approx=True)
        # attention dropout is a no-op in eval mode.  Normalization is deferred to the
        # (S,Dh) context (cheaper than scaling the (S,S) probability block).
        ctx = jnp.dot(p.astype(jnp.bfloat16), vh,
                      preferred_element_type=jnp.float32) * inv       # (S, Dh)
        row_sum = row_sum + jnp.sum(ctx, axis=-1, keepdims=True)
        row_sq = row_sq + jnp.sum(ctx * ctx, axis=-1, keepdims=True)
        ctx_bf = ctx.astype(jnp.bfloat16)
        o_acc = o_acc + jnp.dot(ctx_bf, wo_ref[lo:lo + Dh, :],
                                preferred_element_type=jnp.float32)
        a_acc = a_acc + jnp.dot(ctx_bf, dwo_ref[lo:lo + Dh, :],
                                preferred_element_type=jnp.float32)

    # ---- out-adapter: LN of attn_out reconstructed from the accumulated row stats:
    #      LN(a) @ Wd = r*(a @ Wd) - (r*mu) * colsum(Wd)   (gamma/beta already folded). ----
    inv_e = 1.0 / E
    mu_o = row_sum * inv_e
    var_o = row_sq * inv_e - mu_o * mu_o
    r_o = jax.lax.rsqrt(var_o + 1e-5)
    d_o = r_o * a_acc - (r_o * mu_o) * cwo_ref[...] + dbo_ref[...]
    d_o = _gelu_tanh(d_o).astype(jnp.bfloat16)
    out = (o_acc + bo_ref[...]
           + jnp.dot(d_o, uwo_ref[...], preferred_element_type=jnp.float32)
           + ubo_ref[...])
    o_ref[0] = out.astype(o_ref.dtype)


_PARAM_NAMES = ("wqkv", "bqkv", "dwqkv", "dbqkv", "uwqkv", "ubqkv",
                "wo", "bo", "dwo", "dbo", "cwo", "uwo", "ubo")


def clip_attention_with_adapter(x, packed, *, num_heads):
    """x: (B, S, E) f32.  packed: dict of folded/stacked parameter arrays (pack_params)."""
    B, S, E = x.shape
    head_dim = E // num_heads
    params = [packed[n] for n in _PARAM_NAMES]
    kernel = functools.partial(_attn_adapter_kernel, num_heads=num_heads,
                               head_dim=head_dim, embed_dim=E)

    # Constant-index parameter blocks: their index_map never changes with the grid
    # step, so the pipeline keeps them resident in VMEM instead of re-copying.
    param_specs = [pl.BlockSpec(a.shape, lambda b: (0, 0)) for a in params]
    grid_spec = pltpu.PrefetchScalarGridSpec(
        num_scalar_prefetch=0,
        grid=(B,),
        in_specs=[pl.BlockSpec((1, S, E), lambda b: (b, 0, 0))] + param_specs,
        out_specs=pl.BlockSpec((1, S, E), lambda b: (b, 0, 0)),
    )
    return pl.pallas_call(
        kernel,
        out_shape=jax.ShapeDtypeStruct((B, S, E), x.dtype),
        grid_spec=grid_spec,
        compiler_params=pltpu.CompilerParams(
            dimension_semantics=("parallel",),
            vmem_limit_bytes=48 * 1024 * 1024),
    )(x, *params)


# ---------------- parameter construction (deterministic, synthetic) ----------------

def init_params(key, E, Bn):
    """Deterministic synthetic init.  (The module's own init zeroes the adapter
    up-projections which would make the adapter path trivially zero; small random
    values are used instead so every code path is exercised.)"""
    ks = iter(jax.random.split(key, 64))
    nrm = lambda shape, s=0.1: s * jax.random.normal(next(ks), shape, jnp.float32)
    params = {}
    for name in ("q", "k", "v", "o"):
        params[f"w{name}"] = nrm((E, E))
        params[f"b{name}"] = nrm((E,), 0.05)
    for name in ("q", "k", "v", "o"):
        params[f"{name}_ln_g"] = 1.0 + nrm((E,), 0.05)
        params[f"{name}_ln_b"] = nrm((E,), 0.05)
        params[f"{name}_dw"] = nrm((E, Bn))
        params[f"{name}_db"] = nrm((Bn,), 0.05)
        params[f"{name}_uw"] = nrm((Bn, E))
        params[f"{name}_ub"] = nrm((E,), 0.05)
        params[f"{name}_scale"] = 1.0 + nrm((), 0.1)
    return params


def pack_params(p, E, Bn, *, num_heads):
    """Fold scales / LayerNorm affines into the weights and fuse q/k/v parameter blocks."""
    Dh = E // num_heads
    attn_scale = Dh ** (-0.5)
    Bp = ((Bn + 127) // 128) * 128          # pad bottleneck to full 128-lane width
    f32, bf16 = jnp.float32, jnp.bfloat16

    def fold_down(n):
        # LN(x)@Wd + bd == xhat @ (gamma[:,None]*Wd) + (beta@Wd + bd)
        w = p[f"{n}_ln_g"][:, None] * p[f"{n}_dw"]           # (E, Bn)
        b = p[f"{n}_ln_b"] @ p[f"{n}_dw"] + p[f"{n}_db"]     # (Bn,)
        return jnp.pad(w, ((0, 0), (0, Bp - Bn))), jnp.pad(b, (0, Bp - Bn))

    branch_scale = {"q": p["q_scale"] * attn_scale, "k": p["k_scale"],
                    "v": p["v_scale"], "o": p["o_scale"]}

    # fused q/k/v projection (attention scale folded into the q columns)
    wqkv = jnp.concatenate([p["wq"] * attn_scale, p["wk"], p["wv"]], axis=1)
    bqkv = jnp.concatenate([p["bq"] * attn_scale, p["bk"], p["bv"]])[None, :]

    downs = [fold_down(n) for n in ("q", "k", "v")]
    dwqkv = jnp.concatenate([w for w, _ in downs], axis=1)            # (E, 3*Bp)
    dbqkv = jnp.concatenate([b for _, b in downs])[None, :]           # (1, 3*Bp)

    # block-diagonal up projection; adapter scale (and attn scale for q) folded in
    ublocks = []
    for i, n in enumerate(("q", "k", "v")):
        blk = jnp.zeros((Bp, 3 * E), f32)
        blk = blk.at[:Bn, i * E:(i + 1) * E].set(p[f"{n}_uw"] * branch_scale[n])
        ublocks.append(blk)
    uwqkv = jnp.concatenate(ublocks, axis=0)                          # (3*Bp, 3*E)
    ubqkv = jnp.concatenate([p[f"{n}_ub"] * branch_scale[n]
                             for n in ("q", "k", "v")])[None, :]      # (1, 3*E)

    dwo, dbo = fold_down("o")
    dwo_bf = dwo.astype(bf16)
    # colsum of the *rounded* down weights so the in-kernel LN identity is consistent.
    cwo = jnp.sum(dwo_bf.astype(f32), axis=0, keepdims=True)          # (1, Bp)
    uwo = jnp.pad(p["o_uw"] * branch_scale["o"], ((0, Bp - Bn), (0, 0)))
    ubo = (p["o_ub"] * branch_scale["o"])[None, :]

    return dict(
        wqkv=wqkv.astype(bf16), bqkv=bqkv.astype(f32),
        dwqkv=dwqkv.astype(bf16), dbqkv=dbqkv.astype(f32),
        uwqkv=uwqkv.astype(bf16), ubqkv=ubqkv.astype(f32),
        wo=p["wo"].astype(bf16), bo=p["bo"][None, :].astype(f32),
        dwo=dwo_bf, dbo=dbo[None, :].astype(f32), cwo=cwo.astype(f32),
        uwo=uwo.astype(bf16), ubo=ubo.astype(f32),
    )


# ---------------- pure-JAX reference (mirrors the PyTorch forward, full f32) ----------------

def reference(x, p, num_heads):
    B, S, E = x.shape
    Dh = E // num_heads

    def adapter(h, n):
        mu = h.mean(-1, keepdims=True)
        var = ((h - mu) ** 2).mean(-1, keepdims=True)
        hn = (h - mu) / jnp.sqrt(var + 1e-5) * p[f"{n}_ln_g"] + p[f"{n}_ln_b"]
        d = hn @ p[f"{n}_dw"] + p[f"{n}_db"]
        d = 0.5 * d * (1.0 + jax.scipy.special.erf(d * _SQRT_HALF))   # exact GELU
        return (d @ p[f"{n}_uw"] + p[f"{n}_ub"]) * p[f"{n}_scale"]

    def lin(h, n):
        return h @ p[f"w{n}"] + p[f"b{n}"]

    scale = Dh ** (-0.5)
    q = (lin(x, "q") + adapter(x, "q")) * scale
    k = lin(x, "k") + adapter(x, "k")
    v = lin(x, "v") + adapter(x, "v")
    q = q.reshape(B, S, num_heads, Dh).transpose(0, 2, 1, 3)
    k = k.reshape(B, S, num_heads, Dh).transpose(0, 2, 1, 3)
    v = v.reshape(B, S, num_heads, Dh).transpose(0, 2, 1, 3)
    w = jnp.einsum("bhqd,bhkd->bhqk", q, k)
    w = jax.nn.softmax(w, axis=-1)
    ao = jnp.einsum("bhqk,bhkd->bhqd", w, v)
    ao = ao.transpose(0, 2, 1, 3).reshape(B, S, E)
    return lin(ao, "o") + adapter(ao, "o")


if __name__ == "__main__":
    B, S, E, H, Bn = 2, 8, 32, 4, 8  # batch, seq, hidden, heads, adapter bottleneck

    key = jax.random.PRNGKey(0)
    k_x, k_p = jax.random.split(key)
    x = jax.random.normal(k_x, (B, S, E), jnp.float32)
    params = init_params(k_p, E, Bn)
    packed = pack_params(params, E, Bn, num_heads=H)

    out = clip_attention_with_adapter(x, packed, num_heads=H)
    out = jax.block_until_ready(out)

    ref = reference(x, params, H)
    assert out.shape == (B, S, E)
    err = jnp.max(jnp.abs(out - ref))
    # bf16 matmul inputs + tanh-GELU + approximate softmax reciprocal => looser tolerance
    # than the pure-f32 reference (intentional numerics change, not a bug).
    assert jnp.allclose(out, ref, atol=5e-2, rtol=5e-2), f"max abs err {err}"

    print("KERNEL_OK")
</pallas_src>

<mosaic_0001>
module attributes {stable_mosaic.version = 11 : i64} {
  func.func @_attn_adapter_kernel(%arg0: i32, %arg1: memref<1x8x32xf32, #tpu.memory_space<vmem>>, %arg2: memref<32x96xbf16, #tpu.memory_space<vmem>>, %arg3: memref<1x96xf32, #tpu.memory_space<vmem>>, %arg4: memref<32x384xbf16, #tpu.memory_space<vmem>>, %arg5: memref<1x384xf32, #tpu.memory_space<vmem>>, %arg6: memref<384x96xbf16, #tpu.memory_space<vmem>>, %arg7: memref<1x96xf32, #tpu.memory_space<vmem>>, %arg8: memref<32x32xbf16, #tpu.memory_space<vmem>>, %arg9: memref<1x32xf32, #tpu.memory_space<vmem>>, %arg10: memref<32x128xbf16, #tpu.memory_space<vmem>>, %arg11: memref<1x128xf32, #tpu.memory_space<vmem>>, %arg12: memref<1x128xf32, #tpu.memory_space<vmem>>, %arg13: memref<128x32xbf16, #tpu.memory_space<vmem>>, %arg14: memref<1x32xf32, #tpu.memory_space<vmem>>, %arg15: memref<1x8x32xf32, #tpu.memory_space<vmem>>) attributes {dimension_semantics = [#tpu.dimension_semantics<parallel>], iteration_bounds = array<i64: 2>, scalar_prefetch = 0 : i64, scratch_operands = 0 : i64, tpu.core_type = #tpu.core_type<tc>, window_params = [{transform_indices = @transform_0, window_bounds = array<i64: 1, 8, 32>}, {pipeline_mode = #tpu.pipeline_mode<synchronous>, transform_indices = @transform_1, window_bounds = array<i64: 32, 96>}, {pipeline_mode = #tpu.pipeline_mode<synchronous>, transform_indices = @transform_2, window_bounds = array<i64: 1, 96>}, {pipeline_mode = #tpu.pipeline_mode<synchronous>, transform_indices = @transform_3, window_bounds = array<i64: 32, 384>}, {pipeline_mode = #tpu.pipeline_mode<synchronous>, transform_indices = @transform_4, window_bounds = array<i64: 1, 384>}, {pipeline_mode = #tpu.pipeline_mode<synchronous>, transform_indices = @transform_5, window_bounds = array<i64: 384, 96>}, {pipeline_mode = #tpu.pipeline_mode<synchronous>, transform_indices = @transform_6, window_bounds = array<i64: 1, 96>}, {pipeline_mode = #tpu.pipeline_mode<synchronous>, transform_indices = @transform_7, window_bounds = array<i64: 32, 32>}, {pipeline_mode = #tpu.pipeline_mode<synchronous>, transform_indices = @transform_8, window_bounds = array<i64: 1, 32>}, {pipeline_mode = #tpu.pipeline_mode<synchronous>, transform_indices = @transform_9, window_bounds = array<i64: 32, 128>}, {pipeline_mode = #tpu.pipeline_mode<synchronous>, transform_indices = @transform_10, window_bounds = array<i64: 1, 128>}, {pipeline_mode = #tpu.pipeline_mode<synchronous>, transform_indices = @transform_11, window_bounds = array<i64: 1, 128>}, {pipeline_mode = #tpu.pipeline_mode<synchronous>, transform_indices = @transform_12, window_bounds = array<i64: 128, 32>}, {pipeline_mode = #tpu.pipeline_mode<synchronous>, transform_indices = @transform_13, window_bounds = array<i64: 1, 32>}, {transform_indices = @transform_14, window_bounds = array<i64: 1, 8, 32>}]} {
    %c0 = arith.constant 0 : index
    %c0_0 = arith.constant 0 : index
    %c0_1 = arith.constant 0 : index
    %0 = vector.load %arg1[%c0, %c0_0, %c0_1] : memref<1x8x32xf32, #tpu.memory_space<vmem>>, vector<1x8x32xf32>
    %1 = vector.shape_cast %0 : vector<1x8x32xf32> to vector<8x32xf32>
    %2 = arith.truncf %1 : vector<8x32xf32> to vector<8x32xbf16>
    %c0_2 = arith.constant 0 : index
    %c0_3 = arith.constant 0 : index
    %3 = vector.load %arg2[%c0_2, %c0_3] : memref<32x96xbf16, #tpu.memory_space<vmem>>, vector<32x96xbf16>
    %cst = arith.constant dense<0.000000e+00> : vector<8x96xf32>
    %4 = tpu.matmul %2, %3, %cst {dimension_numbers = #tpu.dot_dimension_numbers<[1], [0], [0], [1], [0, 0, 1, 1], [], []>} : vector<8x32xbf16>, vector<32x96xbf16>, vector<8x96xf32> -> vector<8x96xf32>
    %c0_4 = arith.constant 0 : index
    %c0_5 = arith.constant 0 : index
    %5 = vector.load %arg3[%c0_4, %c0_5] : memref<1x96xf32, #tpu.memory_space<vmem>>, vector<1x96xf32>
    %6 = vector.broadcast %5 : vector<1x96xf32> to vector<8x96xf32>
    %7 = arith.addf %4, %6 : vector<8x96xf32>
    %cst_6 = arith.constant dense<0.000000e+00> : vector<8xf32>
    %8 = vector.multi_reduction <add>, %1, %cst_6 [1] : vector<8x32xf32> to vector<8xf32>
    %9 = vector.shape_cast %8 : vector<8xf32> to vector<8x1xf32>
    %cst_7 = arith.constant 3.200000e+01 : f32
    %10 = vector.broadcast %cst_7 : f32 to vector<8x1xf32>
    %11 = arith.divf %9, %10 : vector<8x1xf32>
    %12 = vector.broadcast %11 : vector<8x1xf32> to vector<8x32xf32>
    %13 = arith.subf %1, %12 : vector<8x32xf32>
    %14 = arith.mulf %13, %13 : vector<8x32xf32>
    %cst_8 = arith.constant dense<0.000000e+00> : vector<8xf32>
    %15 = vector.multi_reduction <add>, %14, %cst_8 [1] : vector<8x32xf32> to vector<8xf32>
    %16 = vector.shape_cast %15 : vector<8xf32> to vector<8x1xf32>
    %cst_9 = arith.constant 3.200000e+01 : f32
    %17 = vector.broadcast %cst_9 : f32 to vector<8x1xf32>
    %18 = arith.divf %16, %17 : vector<8x1xf32>
    %19 = vector.broadcast %11 : vector<8x1xf32> to vector<8x32xf32>
    %20 = arith.subf %1, %19 : vector<8x32xf32>
    %cst_10 = arith.constant 9.99999974E-6 : f32
    %21 = vector.broadcast %cst_10 : f32 to vector<8x1xf32>
    %22 = arith.addf %18, %21 : vector<8x1xf32>
    %23 = math.rsqrt %22 : vector<8x1xf32>
    %24 = vector.broadcast %23 : vector<8x1xf32> to vector<8x32xf32>
    %25 = arith.mulf %20, %24 : vector<8x32xf32>
    %26 = arith.truncf %25 : vector<8x32xf32> to vector<8x32xbf16>
    %c0_11 = arith.constant 0 : index
    %c0_12 = arith.constant 0 : index
    %27 = vector.load %arg4[%c0_11, %c0_12] : memref<32x384xbf16, #tpu.memory_space<vmem>>, vector<32x384xbf16>
    %cst_13 = arith.constant dense<0.000000e+00> : vector<8x384xf32>
    %28 = tpu.matmul %26, %27, %cst_13 {dimension_numbers = #tpu.dot_dimension_numbers<[1], [0], [0], [1], [0, 0, 1, 1], [], []>} : vector<8x32xbf16>, vector<32x384xbf16>, vector<8x384xf32> -> vector<8x384xf32>
    %c0_14 = arith.constant 0 : index
    %c0_15 = arith.constant 0 : index
    %29 = vector.load %arg5[%c0_14, %c0_15] : memref<1x384xf32, #tpu.memory_space<vmem>>, vector<1x384xf32>
    %30 = vector.broadcast %29 : vector<1x384xf32> to vector<8x384xf32>
    %31 = arith.addf %28, %30 : vector<8x384xf32>
    %cst_16 = arith.constant 5.000000e-01 : f32
    %32 = vector.broadcast %cst_16 : f32 to vector<8x384xf32>
    %33 = arith.mulf %32, %31 : vector<8x384xf32>
    %cst_17 = arith.constant 4.471500e-02 : f32
    %34 = vector.broadcast %cst_17 : f32 to vector<8x384xf32>
    %35 = arith.mulf %34, %31 : vector<8x384xf32>
    %36 = arith.mulf %35, %31 : vector<8x384xf32>
    %37 = arith.mulf %36, %31 : vector<8x384xf32>
    %38 = arith.addf %31, %37 : vector<8x384xf32>
    %cst_18 = arith.constant 0.797884583 : f32
    %39 = vector.broadcast %cst_18 : f32 to vector<8x384xf32>
    %40 = arith.mulf %39, %38 : vector<8x384xf32>
    %41 = math.tanh %40 : vector<8x384xf32>
    %cst_19 = arith.constant 1.000000e+00 : f32
    %42 = vector.broadcast %cst_19 : f32 to vector<8x384xf32>
    %43 = arith.addf %42, %41 : vector<8x384xf32>
    %44 = arith.mulf %33, %43 : vector<8x384xf32>
    %45 = arith.truncf %44 : vector<8x384xf32> to vector<8x384xbf16>
    %c0_20 = arith.constant 0 : index
    %c0_21 = arith.constant 0 : index
    %46 = vector.load %arg6[%c0_20, %c0_21] : memref<384x96xbf16, #tpu.memory_space<vmem>>, vector<384x96xbf16>
    %cst_22 = arith.constant dense<0.000000e+00> : vector<8x96xf32>
    %47 = tpu.matmul %45, %46, %cst_22 {dimension_numbers = #tpu.dot_dimension_numbers<[1], [0], [0], [1], [0, 0, 1, 1], [], []>} : vector<8x384xbf16>, vector<384x96xbf16>, vector<8x96xf32> -> vector<8x96xf32>
    %48 = arith.addf %7, %47 : vector<8x96xf32>
    %c0_23 = arith.constant 0 : index
    %c0_24 = arith.constant 0 : index
    %49 = vector.load %arg7[%c0_23, %c0_24] : memref<1x96xf32, #tpu.memory_space<vmem>>, vector<1x96xf32>
    %50 = vector.broadcast %49 : vector<1x96xf32> to vector<8x96xf32>
    %51 = arith.addf %48, %50 : vector<8x96xf32>
    %52 = vector.extract_strided_slice %51 {offsets = [0, 0], sizes = [8, 32], strides = [1, 1]} : vector<8x96xf32> to vector<8x32xf32>
    %53 = arith.truncf %52 : vector<8x32xf32> to vector<8x32xbf16>
    %54 = vector.extract_strided_slice %51 {offsets = [0, 32], sizes = [8, 32], strides = [1, 1]} : vector<8x96xf32> to vector<8x32xf32>
    %55 = arith.truncf %54 : vector<8x32xf32> to vector<8x32xbf16>
    %56 = vector.extract_strided_slice %51 {offsets = [0, 64], sizes = [8, 32], strides = [1, 1]} : vector<8x96xf32> to vector<8x32xf32>
    %57 = arith.truncf %56 : vector<8x32xf32> to vector<8x32xbf16>
    %cst_25 = arith.constant 0.000000e+00 : f32
    %58 = vector.broadcast %cst_25 : f32 to vector<8x32xf32>
    %cst_26 = arith.constant 0.000000e+00 : f32
    %59 = vector.broadcast %cst_26 : f32 to vector<8x128xf32>
    %cst_27 = arith.constant 0.000000e+00 : f32
    %60 = vector.broadcast %cst_27 : f32 to vector<8x1xf32>
    %cst_28 = arith.constant 0.000000e+00 : f32
    %61 = vector.broadcast %cst_28 : f32 to vector<8x1xf32>
    %62 = vector.extract_strided_slice %53 {offsets = [0, 0], sizes = [8, 8], strides = [1, 1]} : vector<8x32xbf16> to vector<8x8xbf16>
    %63 = vector.extract_strided_slice %55 {offsets = [0, 0], sizes = [8, 8], strides = [1, 1]} : vector<8x32xbf16> to vector<8x8xbf16>
    %64 = vector.extract_strided_slice %57 {offsets = [0, 0], sizes = [8, 8], strides = [1, 1]} : vector<8x32xbf16> to vector<8x8xbf16>
    %cst_29 = arith.constant dense<0.000000e+00> : vector<8x8xf32>
    %65 = tpu.matmul %62, %63, %cst_29 {dimension_numbers = #tpu.dot_dimension_numbers<[1], [1], [0], [0], [0, 0, 1, 0], [], []>} : vector<8x8xbf16>, vector<8x8xbf16>, vector<8x8xf32> -> vector<8x8xf32>
    %cst_30 = arith.constant dense<0xFF800000> : vector<8xf32>
    %66 = vector.multi_reduction <maximumf>, %65, %cst_30 [1] : vector<8x8xf32> to vector<8xf32>
    %67 = vector.shape_cast %66 : vector<8xf32> to vector<8x1xf32>
    %68 = vector.broadcast %67 : vector<8x1xf32> to vector<8x8xf32>
    %69 = arith.subf %65, %68 : vector<8x8xf32>
    %70 = math.exp %69 : vector<8x8xf32>
    %cst_31 = arith.constant dense<0.000000e+00> : vector<8xf32>
    %71 = vector.multi_reduction <add>, %70, %cst_31 [1] : vector<8x8xf32> to vector<8xf32>
    %72 = vector.shape_cast %71 : vector<8xf32> to vector<8x1xf32>
    %73 = tpu.reciprocal %72 {approx = true} : vector<8x1xf32> -> vector<8x1xf32>
    %74 = arith.truncf %70 : vector<8x8xf32> to vector<8x8xbf16>
    %cst_32 = arith.constant dense<0.000000e+00> : vector<8x8xf32>
    %75 = tpu.matmul %74, %64, %cst_32 {dimension_numbers = #tpu.dot_dimension_numbers<[1], [0], [0], [1], [0, 0, 1, 1], [], []>} : vector<8x8xbf16>, vector<8x8xbf16>, vector<8x8xf32> -> vector<8x8xf32>
    %76 = vector.broadcast %73 : vector<8x1xf32> to vector<8x8xf32>
    %77 = arith.mulf %75, %76 : vector<8x8xf32>
    %cst_33 = arith.constant dense<0.000000e+00> : vector<8xf32>
    %78 = vector.multi_reduction <add>, %77, %cst_33 [1] : vector<8x8xf32> to vector<8xf32>
    %79 = vector.shape_cast %78 : vector<8xf32> to vector<8x1xf32>
    %80 = arith.addf %60, %79 : vector<8x1xf32>
    %81 = arith.mulf %77, %77 : vector<8x8xf32>
    %cst_34 = arith.constant dense<0.000000e+00> : vector<8xf32>
    %82 = vector.multi_reduction <add>, %81, %cst_34 [1] : vector<8x8xf32> to vector<8xf32>
    %83 = vector.shape_cast %82 : vector<8xf32> to vector<8x1xf32>
    %84 = arith.addf %61, %83 : vector<8x1xf32>
    %85 = arith.truncf %77 : vector<8x8xf32> to vector<8x8xbf16>
    %c0_35 = arith.constant 0 : index
    %c0_36 = arith.constant 0 : index
    %86 = vector.load %arg8[%c0_35, %c0_36] : memref<32x32xbf16, #tpu.memory_space<vmem>>, vector<8x32xbf16>
    %cst_37 = arith.constant dense<0.000000e+00> : vector<8x32xf32>
    %87 = tpu.matmul %85, %86, %cst_37 {dimension_numbers = #tpu.dot_dimension_numbers<[1], [0], [0], [1], [0, 0, 1, 1], [], []>} : vector<8x8xbf16>, vector<8x32xbf16>, vector<8x32xf32> -> vector<8x32xf32>
    %88 = arith.addf %58, %87 : vector<8x32xf32>
    %c0_38 = arith.constant 0 : index
    %c0_39 = arith.constant 0 : index
    %89 = vector.load %arg10[%c0_38, %c0_39] : memref<32x128xbf16, #tpu.memory_space<vmem>>, vector<8x128xbf16>
    %cst_40 = arith.constant dense<0.000000e+00> : vector<8x128xf32>
    %90 = tpu.matmul %85, %89, %cst_40 {dimension_numbers = #tpu.dot_dimension_numbers<[1], [0], [0], [1], [0, 0, 1, 1], [], []>} : vector<8x8xbf16>, vector<8x128xbf16>, vector<8x128xf32> -> vector<8x128xf32>
    %91 = arith.addf %59, %90 : vector<8x128xf32>
    %92 = vector.extract_strided_slice %53 {offsets = [0, 8], sizes = [8, 8], strides = [1, 1]} : vector<8x32xbf16> to vector<8x8xbf16>
    %93 = vector.extract_strided_slice %55 {offsets = [0, 8], sizes = [8, 8], strides = [1, 1]} : vector<8x32xbf16> to vector<8x8xbf16>
    %94 = vector.extract_strided_slice %57 {offsets = [0, 8], sizes = [8, 8], strides = [1, 1]} : vector<8x32xbf16> to vector<8x8xbf16>
    %cst_41 = arith.constant dense<0.000000e+00> : vector<8x8xf32>
    %95 = tpu.matmul %92, %93, %cst_41 {dimension_numbers = #tpu.dot_dimension_numbers<[1], [1], [0], [0], [0, 0, 1, 0], [], []>} : vector<8x8xbf16>, vector<8x8xbf16>, vector<8x8xf32> -> vector<8x8xf32>
    %cst_42 = arith.constant dense<0xFF800000> : vector<8xf32>
    %96 = vector.multi_reduction <maximumf>, %95, %cst_42 [1] : vector<8x8xf32> to vector<8xf32>
    %97 = vector.shape_cast %96 : vector<8xf32> to vector<8x1xf32>
    %98 = vector.broadcast %97 : vector<8x1xf32> to vector<8x8xf32>
    %99 = arith.subf %95, %98 : vector<8x8xf32>
    %100 = math.exp %99 : vector<8x8xf32>
    %cst_43 = arith.constant dense<0.000000e+00> : vector<8xf32>
    %101 = vector.multi_reduction <add>, %100, %cst_43 [1] : vector<8x8xf32> to vector<8xf32>
    %102 = vector.shape_cast %101 : vector<8xf32> to vector<8x1xf32>
    %103 = tpu.reciprocal %102 {approx = true} : vector<8x1xf32> -> vector<8x1xf32>
    %104 = arith.truncf %100 : vector<8x8xf32> to vector<8x8xbf16>
    %cst_44 = arith.constant dense<0.000000e+00> : vector<8x8xf32>
    %105 = tpu.matmul %104, %94, %cst_44 {dimension_numbers = #tpu.dot_dimension_numbers<[1], [0], [0], [1], [0, 0, 1, 1], [], []>} : vector<8x8xbf16>, vector<8x8xbf16>, vector<8x8xf32> -> vector<8x8xf32>
    %106 = vector.broadcast %103 : vector<8x1xf32> to vector<8x8xf32>
    %107 = arith.mulf %105, %106 : vector<8x8xf32>
    %cst_45 = arith.constant dense<0.000000e+00> : vector<8xf32>
    %108 = vector.multi_reduction <add>, %107, %cst_45 [1] : vector<8x8xf32> to vector<8xf32>
    %109 = vector.shape_cast %108 : vector<8xf32> to vector<8x1xf32>
    %110 = arith.addf %80, %109 : vector<8x1xf32>
    %111 = arith.mulf %107, %107 : vector<8x8xf32>
    %cst_46 = arith.constant dense<0.000000e+00> : vector<8xf32>
    %112 = vector.multi_reduction <add>, %111, %cst_46 [1] : vector<8x8xf32> to vector<8xf32>
    %113 = vector.shape_cast %112 : vector<8xf32> to vector<8x1xf32>
    %114 = arith.addf %84, %113 : vector<8x1xf32>
    %115 = arith.truncf %107 : vector<8x8xf32> to vector<8x8xbf16>
    %c8 = arith.constant 8 : index
    %c0_47 = arith.constant 0 : index
    %116 = vector.load %arg8[%c8, %c0_47] : memref<32x32xbf16, #tpu.memory_space<vmem>>, vector<8x32xbf16>
    %cst_48 = arith.constant dense<0.000000e+00> : vector<8x32xf32>
    %117 = tpu.matmul %115, %116, %cst_48 {dimension_numbers = #tpu.dot_dimension_numbers<[1], [0], [0], [1], [0, 0, 1, 1], [], []>} : vector<8x8xbf16>, vector<8x32xbf16>, vector<8x32xf32> -> vector<8x32xf32>
    %118 = arith.addf %88, %117 : vector<8x32xf32>
    %c8_49 = arith.constant 8 : index
    %c0_50 = arith.constant 0 : index
    %119 = vector.load %arg10[%c8_49, %c0_50] : memref<32x128xbf16, #tpu.memory_space<vmem>>, vector<8x128xbf16>
    %cst_51 = arith.constant dense<0.000000e+00> : vector<8x128xf32>
    %120 = tpu.matmul %115, %119, %cst_51 {dimension_numbers = #tpu.dot_dimension_numbers<[1], [0], [0], [1], [0, 0, 1, 1], [], []>} : vector<8x8xbf16>, vector<8x128xbf16>, vector<8x128xf32> -> vector<8x128xf32>
    %121 = arith.addf %91, %120 : vector<8x128xf32>
    %122 = vector.extract_strided_slice %53 {offsets = [0, 16], sizes = [8, 8], strides = [1, 1]} : vector<8x32xbf16> to vector<8x8xbf16>
    %123 = vector.extract_strided_slice %55 {offsets = [0, 16], sizes = [8, 8], strides = [1, 1]} : vector<8x32xbf16> to vector<8x8xbf16>
    %124 = vector.extract_strided_slice %57 {offsets = [0, 16], sizes = [8, 8], strides = [1, 1]} : vector<8x32xbf16> to vector<8x8xbf16>
    %cst_52 = arith.constant dense<0.000000e+00> : vector<8x8xf32>
    %125 = tpu.matmul %122, %123, %cst_52 {dimension_numbers = #tpu.dot_dimension_numbers<[1], [1], [0], [0], [0, 0, 1, 0], [], []>} : vector<8x8xbf16>, vector<8x8xbf16>, vector<8x8xf32> -> vector<8x8xf32>
    %cst_53 = arith.constant dense<0xFF800000> : vector<8xf32>
    %126 = vector.multi_reduction <maximumf>, %125, %cst_53 [1] : vector<8x8xf32> to vector<8xf32>
    %127 = vector.shape_cast %126 : vector<8xf32> to vector<8x1xf32>
    %128 = vector.broadcast %127 : vector<8x1xf32> to vector<8x8xf32>
    %129 = arith.subf %125, %128 : vector<8x8xf32>
    %130 = math.exp %129 : vector<8x8xf32>
    %cst_54 = arith.constant dense<0.000000e+00> : vector<8xf32>
    %131 = vector.multi_reduction <add>, %130, %cst_54 [1] : vector<8x8xf32> to vector<8xf32>
    %132 = vector.shape_cast %131 : vector<8xf32> to vector<8x1xf32>
    %133 = tpu.reciprocal %132 {approx = true} : vector<8x1xf32> -> vector<8x1xf32>
    %134 = arith.truncf %130 : vector<8x8xf32> to vector<8x8xbf16>
    %cst_55 = arith.constant dense<0.000000e+00> : vector<8x8xf32>
    %135 = tpu.matmul %134, %124, %cst_55 {dimension_numbers = #tpu.dot_dimension_numbers<[1], [0], [0], [1], [0, 0, 1, 1], [], []>} : vector<8x8xbf16>, vector<8x8xbf16>, vector<8x8xf32> -> vector<8x8xf32>
    %136 = vector.broadcast %133 : vector<8x1xf32> to vector<8x8xf32>
    %137 = arith.mulf %135, %136 : vector<8x8xf32>
    %cst_56 = arith.constant dense<0.000000e+00> : vector<8xf32>
    %138 = vector.multi_reduction <add>, %137, %cst_56 [1] : vector<8x8xf32> to vector<8xf32>
    %139 = vector.shape_cast %138 : vector<8xf32> to vector<8x1xf32>
    %140 = arith.addf %110, %139 : vector<8x1xf32>
    %141 = arith.mulf %137, %137 : vector<8x8xf32>
    %cst_57 = arith.constant dense<0.000000e+00> : vector<8xf32>
    %142 = vector.multi_reduction <add>, %141, %cst_57 [1] : vector<8x8xf32> to vector<8xf32>
    %143 = vector.shape_cast %142 : vector<8xf32> to vector<8x1xf32>
    %144 = arith.addf %114, %143 : vector<8x1xf32>
    %145 = arith.truncf %137 : vector<8x8xf32> to vector<8x8xbf16>
    %c16 = arith.constant 16 : index
    %c0_58 = arith.constant 0 : index
    %146 = vector.load %arg8[%c16, %c0_58] : memref<32x32xbf16, #tpu.memory_space<vmem>>, vector<8x32xbf16>
    %cst_59 = arith.constant dense<0.000000e+00> : vector<8x32xf32>
    %147 = tpu.matmul %145, %146, %cst_59 {dimension_numbers = #tpu.dot_dimension_numbers<[1], [0], [0], [1], [0, 0, 1, 1], [], []>} : vector<8x8xbf16>, vector<8x32xbf16>, vector<8x32xf32> -> vector<8x32xf32>
    %148 = arith.addf %118, %147 : vector<8x32xf32>
    %c16_60 = arith.constant 16 : index
    %c0_61 = arith.constant 0 : index
    %149 = vector.load %arg10[%c16_60, %c0_61] : memref<32x128xbf16, #tpu.memory_space<vmem>>, vector<8x128xbf16>
    %cst_62 = arith.constant dense<0.000000e+00> : vector<8x128xf32>
    %150 = tpu.matmul %145, %149, %cst_62 {dimension_numbers = #tpu.dot_dimension_numbers<[1], [0], [0], [1], [0, 0, 1, 1], [], []>} : vector<8x8xbf16>, vector<8x128xbf16>, vector<8x128xf32> -> vector<8x128xf32>
    %151 = arith.addf %121, %150 : vector<8x128xf32>
    %152 = vector.extract_strided_slice %53 {offsets = [0, 24], sizes = [8, 8], strides = [1, 1]} : vector<8x32xbf16> to vector<8x8xbf16>
    %153 = vector.extract_strided_slice %55 {offsets = [0, 24], sizes = [8, 8], strides = [1, 1]} : vector<8x32xbf16> to vector<8x8xbf16>
    %154 = vector.extract_strided_slice %57 {offsets = [0, 24], sizes = [8, 8], strides = [1, 1]} : vector<8x32xbf16> to vector<8x8xbf16>
    %cst_63 = arith.constant dense<0.000000e+00> : vector<8x8xf32>
    %155 = tpu.matmul %152, %153, %cst_63 {dimension_numbers = #tpu.dot_dimension_numbers<[1], [1], [0], [0], [0, 0, 1, 0], [], []>} : vector<8x8xbf16>, vector<8x8xbf16>, vector<8x8xf32> -> vector<8x8xf32>
    %cst_64 = arith.constant dense<0xFF800000> : vector<8xf32>
    %156 = vector.multi_reduction <maximumf>, %155, %cst_64 [1] : vector<8x8xf32> to vector<8xf32>
    %157 = vector.shape_cast %156 : vector<8xf32> to vector<8x1xf32>
    %158 = vector.broadcast %157 : vector<8x1xf32> to vector<8x8xf32>
    %159 = arith.subf %155, %158 : vector<8x8xf32>
    %160 = math.exp %159 : vector<8x8xf32>
    %cst_65 = arith.constant dense<0.000000e+00> : vector<8xf32>
    %161 = vector.multi_reduction <add>, %160, %cst_65 [1] : vector<8x8xf32> to vector<8xf32>
    %162 = vector.shape_cast %161 : vector<8xf32> to vector<8x1xf32>
    %163 = tpu.reciprocal %162 {approx = true} : vector<8x1xf32> -> vector<8x1xf32>
    %164 = arith.truncf %160 : vector<8x8xf32> to vector<8x8xbf16>
    %cst_66 = arith.constant dense<0.000000e+00> : vector<8x8xf32>
    %165 = tpu.matmul %164, %154, %cst_66 {dimension_numbers = #tpu.dot_dimension_numbers<[1], [0], [0], [1], [0, 0, 1, 1], [], []>} : vector<8x8xbf16>, vector<8x8xbf16>, vector<8x8xf32> -> vector<8x8xf32>
    %166 = vector.broadcast %163 : vector<8x1xf32> to vector<8x8xf32>
    %167 = arith.mulf %165, %166 : vector<8x8xf32>
    %cst_67 = arith.constant dense<0.000000e+00> : vector<8xf32>
    %168 = vector.multi_reduction <add>, %167, %cst_67 [1] : vector<8x8xf32> to vector<8xf32>
    %169 = vector.shape_cast %168 : vector<8xf32> to vector<8x1xf32>
    %170 = arith.addf %140, %169 : vector<8x1xf32>
    %171 = arith.mulf %167, %167 : vector<8x8xf32>
    %cst_68 = arith.constant dense<0.000000e+00> : vector<8xf32>
    %172 = vector.multi_reduction <add>, %171, %cst_68 [1] : vector<8x8xf32> to vector<8xf32>
    %173 = vector.shape_cast %172 : vector<8xf32> to vector<8x1xf32>
    %174 = arith.addf %144, %173 : vector<8x1xf32>
    %175 = arith.truncf %167 : vector<8x8xf32> to vector<8x8xbf16>
    %c24 = arith.constant 24 : index
    %c0_69 = arith.constant 0 : index
    %176 = vector.load %arg8[%c24, %c0_69] : memref<32x32xbf16, #tpu.memory_space<vmem>>, vector<8x32xbf16>
    %cst_70 = arith.constant dense<0.000000e+00> : vector<8x32xf32>
    %177 = tpu.matmul %175, %176, %cst_70 {dimension_numbers = #tpu.dot_dimension_numbers<[1], [0], [0], [1], [0, 0, 1, 1], [], []>} : vector<8x8xbf16>, vector<8x32xbf16>, vector<8x32xf32> -> vector<8x32xf32>
    %178 = arith.addf %148, %177 : vector<8x32xf32>
    %c24_71 = arith.constant 24 : index
    %c0_72 = arith.constant 0 : index
    %179 = vector.load %arg10[%c24_71, %c0_72] : memref<32x128xbf16, #tpu.memory_space<vmem>>, vector<8x128xbf16>
    %cst_73 = arith.constant dense<0.000000e+00> : vector<8x128xf32>
    %180 = tpu.matmul %175, %179, %cst_73 {dimension_numbers = #tpu.dot_dimension_numbers<[1], [0], [0], [1], [0, 0, 1, 1], [], []>} : vector<8x8xbf16>, vector<8x128xbf16>, vector<8x128xf32> -> vector<8x128xf32>
    %181 = arith.addf %151, %180 : vector<8x128xf32>
    %cst_74 = arith.constant 3.125000e-02 : f32
    %182 = vector.broadcast %cst_74 : f32 to vector<8x1xf32>
    %183 = arith.mulf %170, %182 : vector<8x1xf32>
    %cst_75 = arith.constant 3.125000e-02 : f32
    %184 = vector.broadcast %cst_75 : f32 to vector<8x1xf32>
    %185 = arith.mulf %174, %184 : vector<8x1xf32>
    %186 = arith.mulf %183, %183 : vector<8x1xf32>
    %187 = arith.subf %185, %186 : vector<8x1xf32>
    %cst_76 = arith.constant 9.99999974E-6 : f32
    %188 = vector.broadcast %cst_76 : f32 to vector<8x1xf32>
    %189 = arith.addf %187, %188 : vector<8x1xf32>
    %190 = math.rsqrt %189 : vector<8x1xf32>
    %191 = vector.broadcast %190 : vector<8x1xf32> to vector<8x128xf32>
    %192 = arith.mulf %191, %181 : vector<8x128xf32>
    %193 = arith.mulf %190, %183 : vector<8x1xf32>
    %c0_77 = arith.constant 0 : index
    %c0_78 = arith.constant 0 : index
    %194 = vector.load %arg12[%c0_77, %c0_78] : memref<1x128xf32, #tpu.memory_space<vmem>>, vector<1x128xf32>
    %195 = vector.broadcast %193 : vector<8x1xf32> to vector<8x128xf32>
    %196 = vector.broadcast %194 : vector<1x128xf32> to vector<8x128xf32>
    %197 = arith.mulf %195, %196 : vector<8x128xf32>
    %198 = arith.subf %192, %197 : vector<8x128xf32>
    %c0_79 = arith.constant 0 : index
    %c0_80 = arith.constant 0 : index
    %199 = vector.load %arg11[%c0_79, %c0_80] : memref<1x128xf32, #tpu.memory_space<vmem>>, vector<1x128xf32>
    %200 = vector.broadcast %199 : vector<1x128xf32> to vector<8x128xf32>
    %201 = arith.addf %198, %200 : vector<8x128xf32>
    %cst_81 = arith.constant 5.000000e-01 : f32
    %202 = vector.broadcast %cst_81 : f32 to vector<8x128xf32>
    %203 = arith.mulf %202, %201 : vector<8x128xf32>
    %cst_82 = arith.constant 4.471500e-02 : f32
    %204 = vector.broadcast %cst_82 : f32 to vector<8x128xf32>
    %205 = arith.mulf %204, %201 : vector<8x128xf32>
    %206 = arith.mulf %205, %201 : vector<8x128xf32>
    %207 = arith.mulf %206, %201 : vector<8x128xf32>
    %208 = arith.addf %201, %207 : vector<8x128xf32>
    %cst_83 = arith.constant 0.797884583 : f32
    %209 = vector.broadcast %cst_83 : f32 to vector<8x128xf32>
    %210 = arith.mulf %209, %208 : vector<8x128xf32>
    %211 = math.tanh %210 : vector<8x128xf32>
    %cst_84 = arith.constant 1.000000e+00 : f32
    %212 = vector.broadcast %cst_84 : f32 to vector<8x128xf32>
    %213 = arith.addf %212, %211 : vector<8x128xf32>
    %214 = arith.mulf %203, %213 : vector<8x128xf32>
    %215 = arith.truncf %214 : vector<8x128xf32> to vector<8x128xbf16>
    %c0_85 = arith.constant 0 : index
    %c0_86 = arith.constant 0 : index
    %216 = vector.load %arg9[%c0_85, %c0_86] : memref<1x32xf32, #tpu.memory_space<vmem>>, vector<1x32xf32>
    %217 = vector.broadcast %216 : vector<1x32xf32> to vector<8x32xf32>
    %218 = arith.addf %178, %217 : vector<8x32xf32>
    %c0_87 = arith.constant 0 : index
    %c0_88 = arith.constant 0 : index
    %219 = vector.load %arg13[%c0_87, %c0_88] : memref<128x32xbf16, #tpu.memory_space<vmem>>, vector<128x32xbf16>
    %cst_89 = arith.constant dense<0.000000e+00> : vector<8x32xf32>
    %220 = tpu.matmul %215, %219, %cst_89 {dimension_numbers = #tpu.dot_dimension_numbers<[1], [0], [0], [1], [0, 0, 1, 1], [], []>} : vector<8x128xbf16>, vector<128x32xbf16>, vector<8x32xf32> -> vector<8x32xf32>
    %221 = arith.addf %218, %220 : vector<8x32xf32>
    %c0_90 = arith.constant 0 : index
    %c0_91 = arith.constant 0 : index
    %222 = vector.load %arg14[%c0_90, %c0_91] : memref<1x32xf32, #tpu.memory_space<vmem>>, vector<1x32xf32>
    %223 = vector.broadcast %222 : vector<1x32xf32> to vector<8x32xf32>
    %224 = arith.addf %221, %223 : vector<8x32xf32>
    %c0_92 = arith.constant 0 : index
    %c0_93 = arith.constant 0 : index
    %c0_94 = arith.constant 0 : index
    %225 = vector.load %arg15[%c0_92, %c0_93, %c0_94] : memref<1x8x32xf32, #tpu.memory_space<vmem>>, vector<1x8x32xf32>
    %226 = vector.shape_cast %225 : vector<1x8x32xf32> to vector<8x32xf32>
    %227 = vector.shape_cast %224 : vector<8x32xf32> to vector<1x8x32xf32>
    tpu.vector_store %arg15[%c0_92, %c0_93, %c0_94], %227 {strides = array<i32>} : memref<1x8x32xf32, #tpu.memory_space<vmem>>, vector<1x8x32xf32>,
    return
  }
  func.func @transform_0(%arg0: i32) -> (i32, i32, i32) {
    %c0_i32 = arith.constant 0 : i32
    %c0_i32_0 = arith.constant 0 : i32
    %c0_i32_1 = arith.constant 0 : i32
    return %arg0, %c0_i32, %c0_i32_0 : i32, i32, i32
  }
  func.func @transform_1(%arg0: i32) -> (i32, i32) {
    %c0_i32 = arith.constant 0 : i32
    %c0_i32_0 = arith.constant 0 : i32
    %c0_i32_1 = arith.constant 0 : i32
    return %c0_i32, %c0_i32_0 : i32, i32
  }
  func.func @transform_2(%arg0: i32) -> (i32, i32) {
    %c0_i32 = arith.constant 0 : i32
    %c0_i32_0 = arith.constant 0 : i32
    %c0_i32_1 = arith.constant 0 : i32
    return %c0_i32, %c0_i32_0 : i32, i32
  }
  func.func @transform_3(%arg0: i32) -> (i32, i32) {
    %c0_i32 = arith.constant 0 : i32
    %c0_i32_0 = arith.constant 0 : i32
    %c0_i32_1 = arith.constant 0 : i32
    return %c0_i32, %c0_i32_0 : i32, i32
  }
  func.func @transform_4(%arg0: i32) -> (i32, i32) {
    %c0_i32 = arith.constant 0 : i32
    %c0_i32_0 = arith.constant 0 : i32
    %c0_i32_1 = arith.constant 0 : i32
    return %c0_i32, %c0_i32_0 : i32, i32
  }
  func.func @transform_5(%arg0: i32) -> (i32, i32) {
    %c0_i32 = arith.constant 0 : i32
    %c0_i32_0 = arith.constant 0 : i32
    %c0_i32_1 = arith.constant 0 : i32
    return %c0_i32, %c0_i32_0 : i32, i32
  }
  func.func @transform_6(%arg0: i32) -> (i32, i32) {
    %c0_i32 = arith.constant 0 : i32
    %c0_i32_0 = arith.constant 0 : i32
    %c0_i32_1 = arith.constant 0 : i32
    return %c0_i32, %c0_i32_0 : i32, i32
  }
  func.func @transform_7(%arg0: i32) -> (i32, i32) {
    %c0_i32 = arith.constant 0 : i32
    %c0_i32_0 = arith.constant 0 : i32
    %c0_i32_1 = arith.constant 0 : i32
    return %c0_i32, %c0_i32_0 : i32, i32
  }
  func.func @transform_8(%arg0: i32) -> (i32, i32) {
    %c0_i32 = arith.constant 0 : i32
    %c0_i32_0 = arith.constant 0 : i32
    %c0_i32_1 = arith.constant 0 : i32
    return %c0_i32, %c0_i32_0 : i32, i32
  }
  func.func @transform_9(%arg0: i32) -> (i32, i32) {
    %c0_i32 = arith.constant 0 : i32
    %c0_i32_0 = arith.constant 0 : i32
    %c0_i32_1 = arith.constant 0 : i32
    return %c0_i32, %c0_i32_0 : i32, i32
  }
  func.func @transform_10(%arg0: i32) -> (i32, i32) {
    %c0_i32 = arith.constant 0 : i32
    %c0_i32_0 = arith.constant 0 : i32
    %c0_i32_1 = arith.constant 0 : i32
    return %c0_i32, %c0_i32_0 : i32, i32
  }
  func.func @transform_11(%arg0: i32) -> (i32, i32) {
    %c0_i32 = arith.constant 0 : i32
    %c0_i32_0 = arith.constant 0 : i32
    %c0_i32_1 = arith.constant 0 : i32
    return %c0_i32, %c0_i32_0 : i32, i32
  }
  func.func @transform_12(%arg0: i32) -> (i32, i32) {
    %c0_i32 = arith.constant 0 : i32
    %c0_i32_0 = arith.constant 0 : i32
    %c0_i32_1 = arith.constant 0 : i32
    return %c0_i32, %c0_i32_0 : i32, i32
  }
  func.func @transform_13(%arg0: i32) -> (i32, i32) {
    %c0_i32 = arith.constant 0 : i32
    %c0_i32_0 = arith.constant 0 : i32
    %c0_i32_1 = arith.constant 0 : i32
    return %c0_i32, %c0_i32_0 : i32, i32
  }
  func.func @transform_14(%arg0: i32) -> (i32, i32, i32) {
    %c0_i32 = arith.constant 0 : i32
    %c0_i32_0 = arith.constant 0 : i32
    %c0_i32_1 = arith.constant 0 : i32
    return %arg0, %c0_i32, %c0_i32_0 : i32, i32, i32
  }
}

</mosaic_0001>

<bundles_post_ra>
// kernel: tpu_custom_call.1
= control target key start
LH: loop header
LB: loop body
LE: loop exit
PB: predicated region body
PF: predicated region fallthrough
CT: control target
= control target key end

     0   :  { %s3107_s0 = inlined_call_operand.vmem [shape: f32[2,8,32], index: 0, kind: input, shape index: {}]   ;;  %s3108_s1 = inlined_call_operand.vmem [shape: bf16[32,96], index: 1, kind: input, shape index: {}]   ;;  %s3109_s2 = inlined_call_operand.vmem [shape: f32[1,96], index: 2, kind: input, shape index: {}]   ;;  %s3110_s3 = inlined_call_operand.vmem [shape: bf16[32,384], index: 3, kind: input, shape index: {}]   ;;  %s3111_s4 = inlined_call_operand.vmem [shape: f32[1,384], index: 4, kind: input, shape index: {}]   ;;  %s3112_s5 = inlined_call_operand.vmem [shape: bf16[384,96], index: 5, kind: input, shape index: {}]   ;;  %s3113_s6 = inlined_call_operand.vmem [shape: f32[1,96], index: 6, kind: input, shape index: {}]   ;;  %s3114_s7 = inlined_call_operand.vmem [shape: bf16[32,32], index: 7, kind: input, shape index: {}]   ;;  %s3115_s8 = inlined_call_operand.vmem [shape: f32[1,32], index: 8, kind: input, shape index: {}]   ;;  %s3116_s9 = inlined_call_operand.vmem [shape: bf16[32,128], index: 9, kind: input, shape index: {}]   ;;  %s3117_s10 = inlined_call_operand.vmem [shape: f32[1,128], index: 10, kind: input, shape index: {}]   ;;  %s3118_s11 = inlined_call_operand.vmem [shape: f32[1,128], index: 11, kind: input, shape index: {}]   ;;  %s3119_s12 = inlined_call_operand.vmem [shape: bf16[128,32], index: 12, kind: input, shape index: {}]   ;;  %s3120_s13 = inlined_call_operand.vmem [shape: f32[1,32], index: 13, kind: input, shape index: {}]   ;;  %s3121_s14 = inlined_call_operand.hbm [shape: f32[2,8,32], index: 14, kind: output, shape index: {}]  }
   0x1   :  { %3122 = sst [smem:[#allocation5_spill]] %s3107_s0 }
   0x2   :  { %3123 = sst [smem:[#allocation6_spill]] %s3108_s1 }
   0x3   :  { %3124 = sst [smem:[#allocation7_spill]] %s3109_s2 }
   0x4   :  { %3125 = sst [smem:[#allocation8_spill]] %s3110_s3 }
   0x5   :  { %19 = vsyncpa [#allocation3], 0 }
   0x6   :  { %21 = vsyncpa [#allocation3 + $0x1], 0  ;;  %s2674_s29 = smov 0   ;;  %s2676_s30 = smov 0  }
   0x7   :  { %s2678_s15 = smov 0   ;;  %s2680_s16 = smov 0  }
   0x8 LB: > { %s2695_s17 = sadd.s32 4294967295, %s2582_s16   ;;  %s2080_s18 = sadd.s32 4294967294, %s2582_s16   ;;  %s2582_s16 = sphi %s2680_s16, %s3135_s16   ;;  %s2578_s15 = sphi %s2678_s15, %s3134_s15   ;;  %s2574_s30 = sphi %s2676_s30, %s3133_s30   ;;  %s2570_s29 = sphi %s2674_s29, %s3132_s29  }
   0x9   : > { %s2699_s19 = sadd.s32 1, %s2582_s16   ;;  %s333_s20 = sadd.s32 1, %s2578_s15 }
   0xa   : > { %s330_s21 = ssub.s32 %s2582_s16, %s2699_s19  ;;  %p343_p0 = scmp.ne.s32.totalorder %s2578_s15, %s2574_s30 }
   0xb   : > { %p331_p1 = scmp.eq.s32.totalorder %s330_s21, 0  ;;  %p344_p2 = scmp.eq.s32.totalorder %s2695_s17, 1 }
   0xc   : > { %p349_p3 = scmp.ne.s32.totalorder %s2574_s30, %s2570_s29  ;;  %p350_p4 = scmp.eq.s32.totalorder %s2080_s18, 1 }
   0xd   : > { %s2710_s22 = scalar_select %p331_p1, %s2578_s15, %s333_s20  }
   0xe   : > { %p2712_p5 = por %p344_p2, %p343_p0  ;;  %p2716_p6 = por %p350_p4, %p349_p3 }
   0xf   : > { %p2083_p7 = scmp.ge.s32.totalorder %s2582_s16, 1  ;;  %p414_p8 = scmp.lt.s32.totalorder %s2582_s16, 3 }
  0x11   : > { %p415_p9 = pnand %p2083_p7, %p414_p8 }
  0x12   : > { %p459_p10 = scmp.lt.s32.totalorder (!%p415_p9), %s2695_s17, 1  ;;  %vm489_vm0 = vcmask (!%p415_p9), 261120   ;;  %s3128_s0 = sld [smem:[#allocation5_spill]] (!%p415_p9)  ;;  %v2584_v8 = vmov (!%p415_p9), 0.0   ;;  %vm2585_vm1 = vmmov (!%p415_p9), 0   ;;  %v2586_v17 = vmov (!%p415_p9), 0  }
  0x13   : > { %418 = sbr.rel (%p415_p9) target bundleno = 2978 (0xba2), region = 76  ;;  %s3129_s1 = sld [smem:[#allocation6_spill]] (!%p415_p9)  ;;  %2233 = vmatprep.subr.bf16.mxu1 (!%p415_p9), %v2584_v8  ;;  %2241 = vmatprep.subr.bf16.mxu0 (!%p415_p9), %v2584_v8  ;;  %v2460_v23 = vld [vmem:[%s3112_s5 + $0x80] sm:$0xff] (!%p415_p9)   ;;  %v2463_v31 = vld [vmem:[%s3112_s5 + $0x88] sm:$0xff] (!%p415_p9)   ;;  %v2466_v34 = vld [vmem:[%s3112_s5 + $0x90] sm:$0xff] (!%p415_p9)   ;;  %v558_v52 = vlaneseq (!%p415_p9)  ;;  %vm1004_vm2 = vcmask (!%p415_p9), 64512  }
  0x14   : > { %s3130_s3 = sld [smem:[#allocation8_spill]] (!%p415_p9)  ;;  %2237 = vmatprep.mubr.msk.bf16.mxu1 (!%p415_p9), %vm2585_vm1, %v2584_v8  ;;  %2245 = vmatprep.mubr.msk.bf16.mxu0 (!%p415_p9), %vm2585_vm1, %v2584_v8  ;;  %v2461_v29 = vld [vmem:[%s3112_s5 + $0x40] sm:$0xff] (!%p415_p9)   ;;  %v2464_v32 = vld [vmem:[%s3112_s5 + $0x48] sm:$0xff] (!%p415_p9)   ;;  %v2467_v35 = vld [vmem:[%s3112_s5 + $0x50] sm:$0xff] (!%p415_p9)   ;;  %s3131_s2 = sld [smem:[#allocation7_spill]] (!%p415_p9)  ;;  %vm1067_vm3 = vcmask (!%p415_p9), 1043456  }
  0x15   : > { %v2462_v30 = vld [vmem:[%s3112_s5] sm:$0xff] (!%p415_p9)   ;;  %v2465_v33 = vld [vmem:[%s3112_s5 + $0x8] sm:$0xff] (!%p415_p9)   ;;  %v2468_v36 = vld [vmem:[%s3112_s5 + $0x10] sm:$0xff] (!%p415_p9)   ;;  %v559_v53 = vshrl.u32 (!%p415_p9), %v558_v52, 7  ;;  %s2587_s27 = smov (!%p415_p9), 120   ;;  %s2588_s28 = smov (!%p415_p9), 96  }
  0x16   : > { %v2469_v37 = vld [vmem:[%s3112_s5 + $0x98] sm:$0xff] (!%p415_p9)   ;;  %v2473_v40 = vld [vmem:[%s3112_s5 + $0x60] sm:$0xff] (!%p415_p9)   ;;  %v2476_v43 = vld [vmem:[%s3112_s5 + $0x68] sm:$0xff] (!%p415_p9)   ;;  %s2593_s20 = smov (!%p415_p9), 72   ;;  %s2594_s21 = smov (!%p415_p9), 104  }
  0x17   : > { %v2470_v38 = vld [vmem:[%s3112_s5 + $0x58] sm:$0xff] (!%p415_p9)   ;;  %v2472_v41 = vld [vmem:[%s3112_s5 + $0xa0] sm:$0xff] (!%p415_p9)   ;;  %v2475_v44 = vld [vmem:[%s3112_s5 + $0xa8] sm:$0xff] (!%p415_p9)   ;;  %v560_v54 = vsub.s32 (!%p415_p9), 0, %v559_v53  ;;  %v568_v55 = vsub.s32 (!%p415_p9), 2, %v559_v53  ;;  %v564_v57 = vsub.s32 (!%p415_p9), 1, %v559_v53 }
  0x18   : > { %v2471_v39 = vld [vmem:[%s3112_s5 + $0x18] sm:$0xff] (!%p415_p9)   ;;  %v2474_v42 = vld [vmem:[%s3112_s5 + $0x20] sm:$0xff] (!%p415_p9)   ;;  %v2477_v45 = vld [vmem:[%s3112_s5 + $0x28] sm:$0xff] (!%p415_p9)  }
  0x19   : > { %v2450_v7 = vld [vmem:[%s3129_s1] sm:$0xff] (!%p415_p9)   ;;  %v2451_v9 = vld [vmem:[%s3129_s1 + $0x8] sm:$0xff] (!%p415_p9)   ;;  %v2479_v46 = vld [vmem:[%s3112_s5 + $0x70] sm:$0xff] (!%p415_p9)   ;;  %s2591_s1 = smov (!%p415_p9), 80  }
  0x1a   : > { %s460_s25 = scalar_select %p459_p10, %s2695_s17, 1  ;;  %2234 = vmatpush3.bf16.msra.mxu1 %v2450_v7  ;;  %v2454_v11 = vld [vmem:[%s3130_s3 + $0x4] ss:$12 sps:$4 sm:$0xff]   ;;  %v2452_v12 = vld [vmem:[%s3130_s3] ss:$12 sps:$4 sm:$0xff]   ;;  %v2482_v49 = vld [vmem:[%s3112_s5 + $0x78] sm:$0xff]  }
  0x1b   : > { %2235 = vmatprep.subr.bf16.mxu1 %v2584_v8  ;;  %v2455_v13 = vld [vmem:[%s3130_s3 + $0x8] ss:$12 sps:$4 sm:$0xff]   ;;  %v2459_v15 = vld [vmem:[%s3130_s3 + $0x20] ss:$12 sps:$4 sm:$0xff]   ;;  %v2456_v16 = vld [vmem:[%s3130_s3 + $0x18] ss:$12 sps:$4 sm:$0xff]  }
  0x1c   : > { %s2085_s26 = sshll.u32 %s460_s25, 3  ;;  %v2458_v14 = vld [vmem:[%s3130_s3 + $0x1c] ss:$12 sps:$4 sm:$0xff]   ;;  %2242 = vmatpush3.bf16.msra.mxu0 %v2455_v13  ;;  %v2478_v47 = vld [vmem:[%s3112_s5 + $0xb0] sm:$0xff]   ;;  %v556_v56 = vld [vmem:[%s3111_s4] sm:$0x7] }
  0x1d   : > { %s462_s18 = scalar_lea.vmem %s3128_s0, %s2085_s26  ;;  %2243 = vmatprep.subr.bf16.mxu0 %v2584_v8  ;;  %v2480_v48 = vld [vmem:[%s3112_s5 + $0x30] sm:$0xff]   ;;  %v2481_v50 = vld [vmem:[%s3112_s5 + $0xb8] sm:$0xff]   ;;  %v561_v58 = vrot.slane %v556_v56, %v560_v54  ;;  %v569_v59 = vrot.slane %v556_v56, %v568_v55  ;;  %v565_v60 = vrot.slane %v556_v56, %v564_v57  ;;  %v2122_v52 = vld [vmem:[%s3113_s6] ss:$0 sm:$0xff]  ;;  %s2589_s0 = smov 64  }
  0x1e   : > { %v464_v0 = vld [vmem:[%s462_s18] sm:$0xff]  ;;  %2236 = vmatpush3.bf16.msra.mxu1 %v2451_v9  ;;  %v2483_v51 = vld [vmem:[%s3112_s5 + $0x38] sm:$0xff]   ;;  %s2590_s18 = smov 88   ;;  %s2592_s3 = smov 48  }
  0x1f   : > { %v533_v1 = vsel %vm489_vm0, %v464_v0, 0.0  ;;  %v465_v10 = vpack.c.bf16 %v464_v0, %v464_v0  ;;  %608 = vmatprep.subr.bf16.mxu1 %v2454_v11  ;;  %s2595_s25 = smov 56   ;;  %s2596_s26 = smov 112  }
  0x20   : > { %534 = vadd.xlane.f32.xlu0 %v533_v1  ;;  %2244 = vmatpush3.bf16.msra.mxu0 %v2459_v15 }
  0x21   : > { %2238 = vmatmul.mubr.msk.bf16.vlgmr.msra.gmra.mrb[0].mxu1 %vm489_vm0, %v465_v10  ;;  %2249 = vmatprep.subr.bf16.mxu0 %v2584_v8 }
  0x22   : > { %609 = vmatpush1.bf16.msra.mxu1 %v2452_v12  ;;  %640 = vmatprep.mubr.bf16.mxu1 %v2586_v17 }
  0x23   : > { %610 = vmatprep.subr.bf16.mxu1 %v2458_v14 }
  0x26   : > { %611 = vmatpush1.bf16.msra.mxu1 %v2456_v16 }
  0x27   : > { %2161 = vmatprep.subr.bf16.mxu1 %v2461_v29 }
  0xad   : > { %v535_v2 = vpop.xlane.xlu0 %534 }
  0xae   : > { %v537_v3 = vmul.f32 0.03125, %v535_v2 }
  0xb0   : > { %v538_v4 = vsub.f32 %v464_v0, %v537_v3 }
  0xb2   : > { %v539_v5 = vmul.f32 %v538_v4, %v538_v4 }
  0xb4   : > { %v540_v6 = vsel %vm489_vm0, %v539_v5, 0.0 }
  0xb5   : > { %541 = vadd.xlane.f32.xlu0 %v540_v6 }
  0xf4   : > { %v2771_v25 = vpop.f32.mrb[0].mxu1 }
  0xf5   : > { %v2239_v26 = vpop.f32.mrb[1].mxu1 }
  0xf6   : > { %v530_v27 = vpop.f32.mrb[2].mxu1 }
  0xf7   : > { %v2240_v28 = vpop.f32.mrb[3].mxu1 }
 0x142   : > { %v542_v18 = vpop.xlane.xlu0 %541 }
 0x143   : > { %v543_v19 = vmul.f32 0.03125, %v542_v18 }
 0x145   : > { %v544_v20 = vadd.f32 1e-05, %v543_v19 }
 0x147   : > { %2492 = vrsqrt.f32 %v544_v20 }
 0x151   : > { %v2493_v21 = vpop.eup %2492 }
 0x152   : > { %v546_v22 = vmul.f32 %v2493_v21, %v538_v4 }
 0x154   : > { %v547_v24 = vpack.c.bf16 %v546_v22, %v546_v22 }
 0x156   : > { %2096 = vmatmul.mubr.msk.bf16.vlgmr.msra.gmra.mrb[4].mxu1 %vm489_vm0, %v547_v24  ;;  %2246 = vmatmul.mubr.msk.bf16.vlgmr.msra.gmra.mrb[0].mxu0 %vm489_vm0, %v547_v24 }
 0x157   : > { %2250 = vmatpush3.bf16.msra.mxu0 %v2460_v23  ;;  %2265 = vmatprep.mubr.msk.bf16.mxu0 %vm2585_vm1, %v2584_v8 }
 0x158   : > { %2251 = vmatprep.subr.bf16.mxu0 %v2584_v8  ;;  %2162 = vmatpush3.bf16.msra.mxu1 %v2462_v30 }
 0x159   : > { %2163 = vmatprep.subr.bf16.mxu1 %v2464_v32 }
 0x15b   : > { %2252 = vmatpush3.bf16.msra.mxu0 %v2463_v31 }
 0x15c   : > { %2253 = vmatprep.subr.bf16.mxu0 %v2584_v8  ;;  %2164 = vmatpush3.bf16.msra.mxu1 %v2465_v33 }
 0x15d   : > { %2165 = vmatprep.subr.bf16.mxu1 %v2467_v35 }
 0x15f   : > { %2254 = vmatpush3.bf16.msra.mxu0 %v2466_v34 }
 0x160   : > { %2255 = vmatprep.subr.bf16.mxu0 %v2584_v8  ;;  %2166 = vmatpush3.bf16.msra.mxu1 %v2468_v36 }
 0x161   : > { %2167 = vmatprep.subr.bf16.mxu1 %v2470_v38 }
 0x163   : > { %2256 = vmatpush3.bf16.msra.mxu0 %v2469_v37 }
 0x164   : > { %2257 = vmatprep.subr.bf16.mxu0 %v2584_v8  ;;  %2168 = vmatpush3.bf16.msra.mxu1 %v2471_v39 }
 0x165   : > { %2169 = vmatprep.subr.bf16.mxu1 %v2473_v40 }
 0x167   : > { %2258 = vmatpush3.bf16.msra.mxu0 %v2472_v41 }
 0x168   : > { %2259 = vmatprep.subr.bf16.mxu0 %v2584_v8  ;;  %2170 = vmatpush3.bf16.msra.mxu1 %v2474_v42 }
 0x169   : > { %2171 = vmatprep.subr.bf16.mxu1 %v2476_v43 }
 0x16b   : > { %2260 = vmatpush3.bf16.msra.mxu0 %v2475_v44  ;;  %v2086_v44 = vld [vmem:[%s3131_s2] ss:$0 sm:$0xff] }
 0x16c   : > { %2261 = vmatprep.subr.bf16.mxu0 %v2584_v8  ;;  %2172 = vmatpush3.bf16.msra.mxu1 %v2477_v45 }
 0x16d   : > { %2173 = vmatprep.subr.bf16.mxu1 %v2479_v46 }
 0x16f   : > { %2262 = vmatpush3.bf16.msra.mxu0 %v2478_v47 }
 0x170   : > { %2263 = vmatprep.subr.bf16.mxu0 %v2584_v8  ;;  %2174 = vmatpush3.bf16.msra.mxu1 %v2480_v48 }
 0x171   : > { %2175 = vmatprep.subr.bf16.mxu1 %v2482_v49 }
 0x173   : > { %2264 = vmatpush3.bf16.msra.mxu0 %v2481_v50  ;;  %v528_v50 = vadd.f32 %v2086_v44, %v2771_v25 }
 0x174   : > { %2275 = vmatprep.subr.bf16.mxu0 %v2584_v8  ;;  %2176 = vmatpush3.bf16.msra.mxu1 %v2483_v51 }
 0x175   : > { %2269 = vmatprep.subr.bf16.mxu1 %v2584_v8 }
 0x229   : > { %v642_v61 = vpop.f32.mrb[4].mxu1  ;;  %v683_v62 = vpop.f32.mrb[0].mxu0 }
 0x22a   : > { %v643_v63 = vadd.f32 %v642_v61, %v561_v58  ;;  %v684_v0 = vadd.f32 %v683_v62, %v569_v59  ;;  %v644_v1 = vpop.f32.mrb[5].mxu1  ;;  %v2247_v2 = vpop.f32.mrb[1].mxu0 }
 0x22b   : > { %v645_v3 = vadd.f32 %v644_v1, %v565_v60  ;;  %v646_v4 = vpop.f32.mrb[6].mxu1  ;;  %v686_v5 = vpop.f32.mrb[2].mxu0 }
 0x22c   : > { %v692_v6 = vmul.f32 0.044715, %v643_v63  ;;  %v694_v7 = vmul.f32 0.044715, %v684_v0  ;;  %v647_v9 = vpop.f32.mrb[7].mxu1  ;;  %v2248_v10 = vpop.f32.mrb[3].mxu0 }
 0x22d   : > { %v693_v11 = vmul.f32 0.044715, %v645_v3  ;;  %v691_v27 = vmul.f32 0.5, %v684_v0  ;;  %v690_v30 = vmul.f32 0.5, %v645_v3  ;;  %v689_v33 = vmul.f32 0.5, %v643_v63 }
 0x22e   : > { %v695_v12 = vmul.f32 %v692_v6, %v643_v63  ;;  %v697_v13 = vmul.f32 %v694_v7, %v684_v0 }
 0x22f   : > { %v696_v14 = vmul.f32 %v693_v11, %v645_v3 }
 0x230   : > { %v698_v15 = vmul.f32 %v695_v12, %v643_v63  ;;  %v700_v16 = vmul.f32 %v697_v13, %v684_v0 }
 0x231   : > { %v699_v17 = vmul.f32 %v696_v14, %v645_v3 }
 0x232   : > { %v701_v18 = vadd.f32 %v698_v15, %v643_v63  ;;  %v703_v19 = vadd.f32 %v700_v16, %v684_v0 }
 0x233   : > { %v702_v20 = vadd.f32 %v699_v17, %v645_v3 }
 0x234   : > { %v706_v21 = vmul.f32 0.7978846, %v703_v19  ;;  %v704_v22 = vmul.f32 0.7978846, %v701_v18 }
 0x235   : > { %v705_v23 = vmul.f32 0.7978846, %v702_v20 }
 0x236   : > { %2494 = vtanh.f32 %v706_v21  ;;  %v1122_v21 = vld [vmem:[%s3114_s7] sm:$0xf] }
 0x237   : > { %2496 = vtanh.f32 %v705_v23 }
 0x238   : > { %2498 = vtanh.f32 %v704_v22 }
 0x240   : > { %v2495_v24 = vpop.eup %2494 }
 0x241   : > { %v2497_v26 = vpop.eup %2496  ;;  %v712_v28 = vadd.f32 1.0, %v2495_v24  ;;  %v1295_v24 = vsel %vm1067_vm3, %v1122_v21, 0 }
 0x242   : > { %v2499_v29 = vpop.eup %2498  ;;  %v711_v31 = vadd.f32 1.0, %v2497_v26 }
 0x243   : > { %v715_v32 = vmul.f32 %v712_v28, %v691_v27  ;;  %v710_v34 = vadd.f32 1.0, %v2499_v29 }
 0x244   : > { %v714_v35 = vmul.f32 %v711_v31, %v690_v30 }
 0x245   : > { %v718_v36 = vpack.c.bf16 %v715_v32, %v715_v32  ;;  %v713_v37 = vmul.f32 %v710_v34, %v689_v33 }
 0x246   : > { %v717_v38 = vpack.c.bf16 %v714_v35, %v714_v35 }
 0x247   : > { %2266 = vmatmul.mubr.bf16.vlgmr.msra.gmra.mrb[4].mxu0 %v718_v36  ;;  %v716_v39 = vpack.c.bf16 %v713_v37, %v713_v37 }
 0x248   : > { %943 = vmatprep.mubr.bf16.mxu1 %v717_v38  ;;  %2277 = vmatprep.mubr.msk.bf16.mxu0 %vm2585_vm1, %v2584_v8 }
 0x249   : > { %944 = vmatmul.mubr.bf16.vlgmr.msra.gmra.mrb[8].mxu1 %v716_v39 }
 0x24a   : > { %2271 = vmatprep.mubr.msk.bf16.mxu1 %vm2585_vm1, %v2584_v8 }
 0x31a   : > { %v985_v40 = vpop.f32.mrb[4].mxu0 }
 0x31b   : > { %v2267_v41 = vpop.f32.mrb[5].mxu0 }
 0x31c   : > { %v2177_v42 = vpop.f32.mrb[8].mxu1  ;;  %v988_v43 = vpop.f32.mrb[6].mxu0 }
 0x31d   : > { %v2178_v45 = vpop.f32.mrb[9].mxu1  ;;  %v2268_v46 = vpop.f32.mrb[7].mxu0 }
 0x31e   : > { %v2179_v47 = vadd.f32 %v2178_v45, %v2177_v42  ;;  %v2180_v48 = vpop.f32.mrb[10].mxu1 }
 0x31f   : > { %v2181_v49 = vpop.f32.mrb[11].mxu1 }
 0x320   : > { %v986_v51 = vadd.f32 %v2179_v47, %v985_v40 }
 0x322   : > { %v991_v53 = vadd.f32 %v986_v51, %v528_v50 }
 0x324   : > { %v999_v54 = vadd.f32 %v2122_v52, %v991_v53  ;;  %v1244_v52 = vld [vmem:[%s3114_s7 + $0x4] sm:$0xf] }
 0x325   : > { %v1249_v53 = vsel %vm1067_vm3, %v1244_v52, 0  ;;  %v1805_v52 = vld [vmem:[%s3116_s9 + $0xc] sm:$0xf] }
 0x326   : > { %v2864_v55 = vpack.c.bf16 %v999_v54, %v999_v54 }
 0x328   : > { %1124 = vrot.lane.b32.xlu0 %v2864_v55, %s2587_s27  ;;  %1002 = vrot.lane.b32.xlu1 %v2864_v55, %s2588_s28  ;;  %s2598_s27 = smov [#allocation2]  }
 0x329   : > { %s2524_s28 = sshll.u32 %s2598_s27, 4  ;;  %s2525_s28 = int_to_ptr.vmem [resolvable:$false] %s2524_s28 }
 0x32c   : > { %1062 = vrot.lane.b32.xlu0 %v2864_v55, %s2589_s0  ;;  %1126 = vrot.lane.b32.xlu1 %v2864_v55, %s2590_s18  ;;  %s2597_s0 = smov 40   ;;  %s2152_s18 = sshll.u32 %s2695_s17, 7 }
 0x39a   : > { %v1125_v25 = vpop.permute.xlu0 %1124  ;;  %v1003_v56 = vpop.permute.xlu1 %1002 }
 0x39b   : > { %v1009_v57 = vsel %vm1004_vm2, %v1003_v56, 0 }
 0x39c   : > { %2270 = vmatpush3.bf16.xpose.msra.mxu1 %v1009_v57 }
 0x39d   : > { %2281 = vmatprep.subr.bf16.mxu1 %v2584_v8 }
 0x39e   : > { %v1063_v58 = vpop.permute.xlu0 %1062  ;;  %v1127_v60 = vpop.permute.xlu1 %1126 }
 0x39f   : > { %v1069_v59 = vsel %vm1067_vm3, %v1063_v58, 0  ;;  %v1132_v61 = vsel %vm1004_vm2, %v1127_v60, 0 }
 0x3a0   : > { %2276 = vmatpush3.bf16.msra.mxu0 %v1069_v59 }
 0x3a1   : > { %2287 = vmatprep.subr.bf16.mxu0 %v2584_v8 }
 0x3a3   : > { %2272 = vmatmul.mubr.msk.bf16.vlgmr.msra.gmra.mrb[12].mxu1 %vm1004_vm2, %v2864_v55 }
 0x3a4   : > { %2282 = vmatpush3.bf16.xpose.msra.mxu1 %v1132_v61  ;;  %2283 = vmatprep.mubr.msk.bf16.mxu1 %vm2585_vm1, %v2584_v8 }
 0x3a5   : > { %2293 = vmatprep.subr.bf16.mxu1 %v2584_v8 }
 0x3ab   : > { %2284 = vmatmul.mubr.msk.bf16.vlgmr.msra.gmra.mrb[16].mxu1 %vm1004_vm2, %v1125_v25 }
 0x3ac   : > { %2295 = vmatprep.mubr.msk.bf16.mxu1 %vm2585_vm1, %v2584_v8  ;;  %2294 = vmatpush3.bf16.msra.mxu1 %v1249_v53 }
 0x3ad   : > { %2305 = vmatprep.subr.bf16.mxu1 %v2584_v8 }
 0x476   : > { %v1045_v62 = vpop.f32.mrb[12].mxu1 }
 0x477   : > { %v2273_v63 = vpop.f32.mrb[13].mxu1  ;;  %v1051_v0 = vsel %vm1004_vm2, %v1045_v62, -inf }
 0x478   : > { %1052 = vmax.xlane.f32.xlu1 %v1051_v0  ;;  %v1048_v1 = vpop.f32.mrb[14].mxu1 }
 0x479   : > { %v2274_v2 = vpop.f32.mrb[15].mxu1  ;;  %v1337_v1 = vld [vmem:[%s3116_s9 + $0x4] sm:$0xf] }
 0x47e   : > { %v1168_v3 = vpop.f32.mrb[16].mxu1 }
 0x47f   : > { %v2285_v4 = vpop.f32.mrb[17].mxu1  ;;  %v1174_v5 = vsel %vm1004_vm2, %v1168_v3, -inf }
 0x480   : > { %1175 = vmax.xlane.f32.xlu0 %v1174_v5  ;;  %v1171_v6 = vpop.f32.mrb[18].mxu1  ;;  %v1339_v4 = vsel %vm1067_vm3, %v1337_v1, 0  ;;  %v1123_v5 = vld [vmem:[%s3116_s9] sm:$0xf] }
 0x481   : > { %v2286_v7 = vpop.f32.mrb[19].mxu1  ;;  %v1382_v6 = vsel %vm1067_vm3, %v1123_v5, 0  ;;  %v2487_v5 = vld [vmem:[%s3119_s12 + $0x18] sm:$0xff]  }
 0x496   : > { %1426 = vrot.lane.b32.xlu0 %v2864_v55, %s2591_s1 }
 0x49a   : > { %1485 = vrot.lane.b32.xlu0 %v2864_v55, %s2592_s3 }
 0x49e   : > { %1639 = vrot.lane.b32.xlu0 %v2864_v55, %s2593_s20 }
 0x4a2   : > { %1637 = vrot.lane.b32.xlu0 %v2864_v55, %s2594_s21  ;;  %s456_s21 = sand.u32 1, %s2574_s30  }
 0x4a3   : > { %s2008_s17 = scalar_lea.sflag [#allocation3], %s456_s21 }
 0x505   : > { %v1053_v9 = vpop.xlane.xlu1 %1052 }
 0x506   : > { %v1054_v10 = vsub.f32 %v1045_v62, %v1053_v9 }
 0x508   : > { %v1055_v11 = vmul.f32 1.442695, %v1054_v10 }
 0x50a   : > { %2500 = vpow2.f32 %v1055_v11 }
 0x50d   : > { %v1176_v15 = vpop.xlane.xlu0 %1175 }
 0x50e   : > { %v1177_v16 = vsub.f32 %v1168_v3, %v1176_v15 }
 0x510   : > { %v1178_v17 = vmul.f32 1.442695, %v1177_v16 }
 0x511   : > { %v1427_v30 = vpop.permute.xlu0 %1426 }
 0x512   : > { %2502 = vpow2.f32 %v1178_v17  ;;  %v1432_v34 = vsel %vm1004_vm2, %v1427_v30, 0 }
 0x514   : > { %v2501_v12 = vpop.eup %2500 }
 0x515   : > { %v1057_v13 = vsel %vm1004_vm2, %v2501_v12, 0.0  ;;  %v1061_v14 = vpack.c.bf16 %v2501_v12, %v2501_v12  ;;  %v1486_v35 = vpop.permute.xlu0 %1485 }
 0x516   : > { %1058 = vadd.xlane.f32.xlu1 %v1057_v13  ;;  %v1491_v37 = vsel %vm1067_vm3, %v1486_v35, 0  ;;  %v1592_v35 = vld [vmem:[%s3116_s9 + $0x8] sm:$0xf] }
 0x517   : > { %2278 = vmatmul.mubr.msk.bf16.vlgmr.msra.gmra.mrb[8].mxu0 %vm1004_vm2, %v1061_v14 }
 0x518   : > { %2289 = vmatprep.mubr.msk.bf16.mxu0 %vm2585_vm1, %v2584_v8 }
 0x519   : > { %v1640_v58 = vpop.permute.xlu0 %1639 }
 0x51c   : > { %v2503_v19 = vpop.eup %2502 }
 0x51d   : > { %v1184_v23 = vpack.c.bf16 %v2503_v19, %v2503_v19  ;;  %v1180_v51 = vsel %vm1004_vm2, %v2503_v19, 0.0  ;;  %v1638_v61 = vpop.permute.xlu0 %1637 }
 0x527   : > { %1185 = vrot.lane.b32.xlu1 %v2864_v55, %s2595_s25  ;;  %s2084_s25 = sshll.u32 %s456_s21, 3 }
 0x528   : > { %s458_s1 = scalar_lea.vmem [#allocation2], %s2084_s25 }
 0x529   : > { %s2021_s3 = sshll.u32 %s458_s1, 4  ;;  %s3066_s3 = int_to_ptr.vmem [resolvable:$true] %s2021_s3 }
 0x52a   : > { %s2520_s25 = scalar_lea.vmem %s3066_s3, 128  ;;  %p2527_p0 = scmp.lt.s32.totalorder %s3066_s3, %s2525_s28 }
 0x52b   : > { %1424 = vrot.lane.b32.xlu1 %v2864_v55, %s2596_s26  ;;  %s3064_s26 = scalar_lea.hbm %s3121_s14, %s2152_s18  ;;  %p2521_p11 = scmp.ne.s32.totalorder %s3066_s3, %s2520_s25 }
 0x52d   : > { %p2522_p12 = pnand %p2521_p11, %p2712_p5 }
 0x52f   : > { %p2523_p13 = pneg %p2522_p12 }
 0x5a3   : > { %v1059_v18 = vpop.xlane.xlu1 %1058 }
 0x5a4   : > { %2504 = vrcp.f32 %v1059_v18  ;;  %v1544_v18 = vld [vmem:[%s3114_s7 + $0x8] sm:$0xf] }
 0x5a5   : > { %v1549_v19 = vsel %vm1067_vm3, %v1544_v18, 0 }
 0x5a7   : > { %v1186_v20 = vpop.permute.xlu1 %1185 }
 0x5a8   : > { %v1191_v22 = vsel %vm1067_vm3, %v1186_v20, 0 }
 0x5a9   : > { %2288 = vmatpush3.bf16.msra.mxu0 %v1191_v22 }
 0x5aa   : > { %2299 = vmatprep.subr.bf16.mxu0 %v2584_v8 }
 0x5ab   : > { %v1425_v36 = vpop.permute.xlu1 %1424 }
 0x5ac   : > { %2290 = vmatmul.mubr.msk.bf16.vlgmr.msra.gmra.mrb[12].mxu0 %vm1004_vm2, %v1184_v23 }
 0x5ad   : > { %2300 = vmatpush3.bf16.msra.mxu0 %v1295_v24  ;;  %2301 = vmatprep.mubr.msk.bf16.mxu0 %vm2585_vm1, %v2584_v8 }
 0x5ae   : > { %2317 = vmatprep.subr.bf16.mxu0 %v2584_v8  ;;  %v2505_v26 = vpop.eup %2504 }
 0x5ea   : > { %v1105_v27 = vpop.f32.mrb[8].mxu0 }
 0x5eb   : > { %v2905_v28 = vmul.f32 %v2505_v26, %v1105_v27  ;;  %v2279_v29 = vpop.f32.mrb[9].mxu0 }
 0x5ec   : > { %v1108_v31 = vpop.f32.mrb[10].mxu0 }
 0x5ed   : > { %v2909_v32 = vpack.c.bf16 %v2905_v28, %v2905_v28  ;;  %v2280_v33 = vpop.f32.mrb[11].mxu0 }
 0x5ef   : > { %2302 = vmatmul.mubr.msk.bf16.vlgmr.msra.gmra.mrb[16].mxu0 %vm1004_vm2, %v2909_v32 }
 0x5f0   : > { %2318 = vmatpush3.bf16.xpose.msra.mxu0 %v1432_v34  ;;  %2319 = vmatprep.mubr.msk.bf16.mxu0 %vm2585_vm1, %v2584_v8 }
 0x5f1   : > { %2323 = vmatprep.subr.bf16.mxu0 %v2584_v8 }
 0x5f7   : > { %2320 = vmatmul.mubr.msk.bf16.vlgmr.msra.gmra.mrb[20].mxu0 %vm1004_vm2, %v1425_v36 }
 0x5f8   : > { %2324 = vmatpush3.bf16.msra.mxu0 %v1491_v37  ;;  %2325 = vmatprep.mubr.msk.bf16.mxu0 %vm2585_vm1, %v2584_v8 }
 0x5f9   : > { %2341 = vmatprep.subr.bf16.mxu0 %v2584_v8 }
 0x67f   : > { %v1227_v38 = vpop.f32.mrb[12].mxu0 }
 0x680   : > { %v2291_v39 = vpop.f32.mrb[13].mxu0 }
 0x681   : > { %v1230_v40 = vpop.f32.mrb[14].mxu0  ;;  %v1112_v39 = vsel %vm1004_vm2, %v2905_v28, 0.0 }
 0x682   : > { %v2292_v41 = vpop.f32.mrb[15].mxu0 }
 0x683   : > { %v1116_v41 = vmul.f32 %v2905_v28, %v2905_v28 }
 0x6c2   : > { %v2922_v42 = vpop.f32.mrb[16].mxu0 }
 0x6c3   : > { %v2303_v43 = vpop.f32.mrb[17].mxu0 }
 0x6c4   : > { %v1334_v44 = vpop.f32.mrb[18].mxu0 }
 0x6c5   : > { %v2304_v45 = vpop.f32.mrb[19].mxu0 }
 0x6ca   : > { %v1468_v46 = vpop.f32.mrb[20].mxu0 }
 0x6cb   : > { %v2321_v47 = vpop.f32.mrb[21].mxu0  ;;  %v1474_v48 = vsel %vm1004_vm2, %v1468_v46, -inf }
 0x6cc   : > { %1475 = vmax.xlane.f32.xlu1 %v1474_v48  ;;  %v1471_v49 = vpop.f32.mrb[22].mxu0  ;;  %v1757_v47 = vld [vmem:[%s3114_s7 + $0xc] sm:$0xf] }
 0x6cd   : > { %v2322_v50 = vpop.f32.mrb[23].mxu0  ;;  %v1762_v48 = vsel %vm1067_vm3, %v1757_v47, 0 }
 0x6dd   : > { %1698 = vrot.lane.b32.xlu1 %v2864_v55, %s2597_s0  ;;  %v1645_v55 = vsel %vm1004_vm2, %v1640_v58, 0  ;;  %s2526_s0 = scalar_lea.vmem %s2525_s28, 256 }
 0x6de   : > { %p2528_p1 = scmp.lt.s32.totalorder %s2526_s0, %s2520_s25 }
 0x6e0   : > { %p2529_p2 = por %p2528_p1, %p2527_p0 }
 0x6e2   : > { %p2530_p3 = pnand %p2529_p2, %p2523_p13 }
 0x701   : > { %1181 = vadd.xlane.f32.xlu1 %v1180_v51 }
 0x759   : > { %v1476_v54 = vpop.xlane.xlu1 %1475 }
 0x75a   : > { %v1477_v25 = vsub.f32 %v1468_v46, %v1476_v54 }
 0x75c   : > { %v1478_v56 = vmul.f32 1.442695, %v1477_v25 }
 0x75d   : > { %v1699_v60 = vpop.permute.xlu1 %1698 }
 0x75e   : > { %2506 = vpow2.f32 %v1478_v56  ;;  %v1704_v62 = vsel %vm1067_vm3, %v1699_v60, 0 }
 0x768   : > { %v2507_v57 = vpop.eup %2506 }
 0x769   : > { %v1484_v59 = vpack.c.bf16 %v2507_v57, %v2507_v57  ;;  %v1480_v17 = vsel %vm1004_vm2, %v2507_v57, 0.0 }
 0x76b   : > { %2326 = vmatmul.mubr.msk.bf16.vlgmr.msra.gmra.mrb[24].mxu0 %vm1004_vm2, %v1484_v59 }
 0x76c   : > { %2342 = vmatpush3.bf16.xpose.msra.mxu0 %v1645_v55  ;;  %2343 = vmatprep.mubr.msk.bf16.mxu0 %vm2585_vm1, %v2584_v8  ;;  %v1807_v55 = vsel %vm1067_vm3, %v1805_v52, 0 }
 0x76d   : > { %2347 = vmatprep.subr.bf16.mxu0 %v2584_v8 }
 0x773   : > { %2344 = vmatmul.mubr.msk.bf16.vlgmr.msra.gmra.mrb[28].mxu0 %vm1004_vm2, %v1638_v61 }
 0x774   : > { %2348 = vmatpush3.bf16.msra.mxu0 %v1704_v62  ;;  %2349 = vmatprep.mubr.msk.bf16.mxu0 %vm2585_vm1, %v2584_v8 }
 0x775   : > { %2365 = vmatprep.subr.bf16.mxu0 %v2584_v8 }
 0x78e   : > { %v1182_v63 = vpop.xlane.xlu1 %1181 }
 0x78f   : > { %2508 = vrcp.f32 %v1182_v63 }
 0x799   : > { %v2509_v0 = vpop.eup %2508 }
 0x79a   : > { %v2945_v2 = vmul.f32 %v2509_v0, %v1227_v38  ;;  %v1594_v38 = vsel %vm1067_vm3, %v1592_v35, 0 }
 0x79c   : > { %v1243_v3 = vpack.c.bf16 %v2945_v2, %v2945_v2  ;;  %v1234_v40 = vsel %vm1004_vm2, %v2945_v2, 0.0  ;;  %v1238_v43 = vmul.f32 %v2945_v2, %v2945_v2  ;;  %v2484_v2 = vld [vmem:[%s3119_s12] sm:$0xff]  }
 0x79e   : > { %2296 = vmatmul.mubr.msk.bf16.vlgmr.msra.gmra.mrb[20].mxu1 %vm1004_vm2, %v1243_v3  ;;  %v1239_v44 = vsel %vm1004_vm2, %v1238_v43, 0.0  ;;  %v2140_v43 = vld [vmem:[%s3117_s10] ss:$0 sm:$0xff] }
 0x79f   : > { %2306 = vmatpush3.bf16.msra.mxu1 %v1339_v4  ;;  %2307 = vmatprep.mubr.msk.bf16.mxu1 %vm2585_vm1, %v2584_v8  ;;  %v2486_v4 = vld [vmem:[%s3119_s12 + $0x10] sm:$0xff]  }
 0x7a0   : > { %2311 = vmatprep.subr.bf16.mxu1 %v2584_v8 }
 0x7a6   : > { %2308 = vmatmul.mubr.msk.bf16.vlgmr.msra.gmra.mrb[24].mxu1 %vm1004_vm2, %v1243_v3  ;;  %v2485_v3 = vld [vmem:[%s3119_s12 + $0x8] sm:$0xff]  }
 0x7a7   : > { %2312 = vmatpush3.bf16.msra.mxu1 %v1382_v6  ;;  %2313 = vmatprep.mubr.msk.bf16.mxu1 %vm2585_vm1, %v2584_v8  ;;  %v2488_v6 = vld [vmem:[%s3119_s12 + $0x20] sm:$0xff]  }
 0x7a8   : > { %2329 = vmatprep.subr.bf16.mxu1 %v2584_v8 }
 0x7b2   : > { %2314 = vmatmul.mubr.msk.bf16.vlgmr.msra.gmra.mrb[24].mxu1 %vm1004_vm2, %v2909_v32 }
 0x7b3   : > { %2331 = vmatprep.mubr.msk.bf16.mxu1 %vm2585_vm1, %v2584_v8  ;;  %2330 = vmatpush3.bf16.msra.mxu1 %v1549_v19 }
 0x7b4   : > { %2335 = vmatprep.subr.bf16.mxu1 %v2584_v8 }
 0x83e   : > { %v1527_v7 = vpop.f32.mrb[24].mxu0 }
 0x83f   : > { %v2327_v9 = vpop.f32.mrb[25].mxu0 }
 0x840   : > { %v1530_v10 = vpop.f32.mrb[26].mxu0  ;;  %v2490_v9 = vld [vmem:[%s3119_s12 + $0x30] sm:$0xff]  }
 0x841   : > { %v2328_v11 = vpop.f32.mrb[27].mxu0  ;;  %v2491_v10 = vld [vmem:[%s3119_s12 + $0x38] sm:$0xff]  }
 0x846   : > { %v1681_v12 = vpop.f32.mrb[28].mxu0 }
 0x847   : > { %v2345_v13 = vpop.f32.mrb[29].mxu0  ;;  %v1687_v14 = vsel %vm1004_vm2, %v1681_v12, -inf }
 0x848   : > { %1688 = vmax.xlane.f32.xlu0 %v1687_v14  ;;  %v1684_v15 = vpop.f32.mrb[30].mxu0 }
 0x849   : > { %v2346_v16 = vpop.f32.mrb[31].mxu0 }
 0x84c   : > { %1481 = vadd.xlane.f32.xlu0 %v1480_v17 }
 0x871   : > { %v1285_v20 = vpop.f32.mrb[20].mxu1 }
 0x872   : > { %v1332_v21 = vadd.f32 %v2922_v42, %v1285_v20  ;;  %v2297_v22 = vpop.f32.mrb[21].mxu1  ;;  %v1117_v42 = vsel %vm1004_vm2, %v1116_v41, 0.0 }
 0x873   : > { %v1288_v23 = vpop.f32.mrb[22].mxu1 }
 0x874   : > { %v2298_v24 = vpop.f32.mrb[23].mxu1 }
 0x8d5   : > { %v1689_v26 = vpop.xlane.xlu0 %1688 }
 0x8d6   : > { %v1690_v27 = vsub.f32 %v1681_v12, %v1689_v26 }
 0x8d8   : > { %v1691_v29 = vmul.f32 1.442695, %v1690_v27 }
 0x8d9   : > { %v1482_v30 = vpop.xlane.xlu0 %1481 }
 0x8da   : > { %2510 = vpow2.f32 %v1691_v29 }
 0x8db   : > { %2512 = vrcp.f32 %v1482_v30 }
 0x8e4   : > { %v2511_v31 = vpop.eup %2510 }
 0x8e5   : > { %v2513_v32 = vpop.eup %2512  ;;  %v1693_v33 = vsel %vm1004_vm2, %v2511_v31, 0.0  ;;  %v1697_v34 = vpack.c.bf16 %v2511_v31, %v2511_v31 }
 0x8e6   : > { %v1533_v36 = vmul.f32 %v2513_v32, %v1527_v7  ;;  %1694 = vadd.xlane.f32.xlu0 %v1693_v33  ;;  %v2489_v7 = vld [vmem:[%s3119_s12 + $0x28] sm:$0xff]  }
 0x8e7   : > { %2350 = vmatmul.mubr.msk.bf16.vlgmr.msra.gmra.mrb[32].mxu0 %vm1004_vm2, %v1697_v34 }
 0x8e8   : > { %v1543_v37 = vpack.c.bf16 %v1533_v36, %v1533_v36  ;;  %2381 = vmatprep.mubr.msk.bf16.mxu0 %vm2585_vm1, %v2584_v8  ;;  %v1534_v45 = vsel %vm1004_vm2, %v1533_v36, 0.0  ;;  %v1538_v46 = vmul.f32 %v1533_v36, %v1533_v36  ;;  %2366 = vmatpush3.bf16.msra.mxu0 %v2484_v2 }
 0x8e9   : > { %2367 = vmatprep.subr.bf16.mxu0 %v2584_v8 }
 0x8ea   : > { %2332 = vmatmul.mubr.msk.bf16.vlgmr.msra.gmra.mrb[28].mxu1 %vm1004_vm2, %v1543_v37  ;;  %1113 = vadd.xlane.f32.xlu0 %v1112_v39  ;;  %v1539_v28 = vsel %vm1004_vm2, %v1538_v46, 0.0 }
 0x8eb   : > { %2336 = vmatpush3.bf16.msra.mxu1 %v1594_v38  ;;  %2337 = vmatprep.mubr.msk.bf16.mxu1 %vm2585_vm1, %v2584_v8  ;;  %v2139_v38 = vld [vmem:[%s3118_s11] ss:$0 sm:$0xff] }
 0x8ec   : > { %2353 = vmatprep.subr.bf16.mxu1 %v2584_v8  ;;  %2368 = vmatpush3.bf16.msra.mxu0 %v2485_v3 }
 0x8ed   : > { %2369 = vmatprep.subr.bf16.mxu0 %v2584_v8 }
 0x8ee   : > { %1235 = vadd.xlane.f32.xlu0 %v1234_v40 }
 0x8f0   : > { %2370 = vmatpush3.bf16.msra.mxu0 %v2486_v4 }
 0x8f1   : > { %2371 = vmatprep.subr.bf16.mxu0 %v2584_v8 }
 0x8f2   : > { %2338 = vmatmul.mubr.msk.bf16.vlgmr.msra.gmra.mrb[24].mxu1 %vm1004_vm2, %v1543_v37  ;;  %1118 = vadd.xlane.f32.xlu0 %v1117_v42 }
 0x8f3   : > { %2355 = vmatprep.mubr.msk.bf16.mxu1 %vm2585_vm1, %v2584_v8  ;;  %2354 = vmatpush3.bf16.msra.mxu1 %v1762_v48 }
 0x8f4   : > { %2359 = vmatprep.subr.bf16.mxu1 %v2584_v8  ;;  %2372 = vmatpush3.bf16.msra.mxu0 %v2487_v5 }
 0x8f5   : > { %2373 = vmatprep.subr.bf16.mxu0 %v2584_v8 }
 0x8f6   : > { %1240 = vadd.xlane.f32.xlu0 %v1239_v44 }
 0x8f8   : > { %2374 = vmatpush3.bf16.msra.mxu0 %v2488_v6 }
 0x8f9   : > { %2375 = vmatprep.subr.bf16.mxu0 %v2584_v8 }
 0x8fa   : > { %1535 = vadd.xlane.f32.xlu0 %v1534_v45 }
 0x8fc   : > { %2376 = vmatpush3.bf16.msra.mxu0 %v2489_v7 }
 0x8fd   : > { %2377 = vmatprep.subr.bf16.mxu0 %v2584_v8 }
 0x8fe   : > { %1540 = vadd.xlane.f32.xlu0 %v1539_v28 }
 0x900   : > { %2378 = vmatpush3.bf16.msra.mxu0 %v2490_v9 }
 0x901   : > { %2379 = vmatprep.subr.bf16.mxu0 %v2584_v8 }
 0x904   : > { %2380 = vmatpush3.bf16.msra.mxu0 %v2491_v10 }
 0x973   : > { %v1695_v49 = vpop.xlane.xlu0 %1694 }
 0x974   : > { %2514 = vrcp.f32 %v1695_v49 }
 0x977   : > { %v1114_v11 = vpop.xlane.xlu0 %1113 }
 0x97b   : > { %v1236_v12 = vpop.xlane.xlu0 %1235 }
 0x97c   : > { %v1237_v16 = vadd.f32 %v1236_v12, %v1114_v11 }
 0x97e   : > { %v2515_v50 = vpop.eup %2514 }
 0x97f   : > { %v1119_v13 = vpop.xlane.xlu0 %1118 }
 0x983   : > { %v1241_v14 = vpop.xlane.xlu0 %1240 }
 0x984   : > { %v1242_v20 = vadd.f32 %v1241_v14, %v1119_v13 }
 0x987   : > { %v1536_v15 = vpop.xlane.xlu0 %1535 }
 0x988   : > { %v1537_v19 = vadd.f32 %v1536_v15, %v1237_v16 }
 0x98b   : > { %v1541_v17 = vpop.xlane.xlu0 %1540 }
 0x98c   : > { %v1542_v23 = vadd.f32 %v1541_v17, %v1242_v20 }
 0x9ba   : > { %v1740_v51 = vpop.f32.mrb[32].mxu0 }
 0x9bb   : > { %v1746_v53 = vmul.f32 %v2515_v50, %v1740_v51  ;;  %v2351_v54 = vpop.f32.mrb[33].mxu0 }
 0x9bc   : > { %v1743_v25 = vpop.f32.mrb[34].mxu0 }
 0x9bd   : > { %v1756_v56 = vpack.c.bf16 %v1746_v53, %v1746_v53  ;;  %v1585_v57 = vpop.f32.mrb[28].mxu1  ;;  %v2352_v58 = vpop.f32.mrb[35].mxu0  ;;  %v1747_v59 = vsel %vm1004_vm2, %v1746_v53, 0.0  ;;  %v1751_v60 = vmul.f32 %v1746_v53, %v1746_v53 }
 0x9be   : > { %v1591_v61 = vadd.f32 %v1585_v57, %v1332_v21  ;;  %v2333_v62 = vpop.f32.mrb[29].mxu1  ;;  %1748 = vadd.xlane.f32.xlu1 %v1747_v59  ;;  %v2141_v57 = vld [vmem:[%s3115_s8] ss:$0 sm:$0xff] }
 0x9bf   : > { %v1588_v63 = vpop.f32.mrb[30].mxu1  ;;  %2356 = vmatmul.mubr.msk.bf16.vlgmr.msra.gmra.mrb[32].mxu1 %vm1004_vm2, %v1756_v56  ;;  %v1752_v0 = vsel %vm1004_vm2, %v1751_v60, 0.0 }
 0x9c0   : > { %v2334_v1 = vpop.f32.mrb[31].mxu1  ;;  %2360 = vmatpush3.bf16.msra.mxu1 %v1807_v55  ;;  %1753 = vadd.xlane.f32.xlu0 %v1752_v0  ;;  %v2150_v55 = vld [vmem:[%s3120_s13] ss:$0 sm:$0xff] }
 0x9c1   : > { %2361 = vmatprep.mubr.msk.bf16.mxu1 %vm2585_vm1, %v2584_v8 }
 0x9c7   : > { %2362 = vmatmul.mubr.msk.bf16.vlgmr.msra.gmra.mrb[24].mxu1 %vm1004_vm2, %v1756_v56 }
 0xa4b   : > { %v1749_v18 = vpop.xlane.xlu1 %1748 }
 0xa4c   : > { %v1750_v21 = vadd.f32 %v1749_v18, %v1537_v19 }
 0xa4d   : > { %v1754_v22 = vpop.xlane.xlu0 %1753 }
 0xa4e   : > { %v1850_v24 = vmul.f32 0.03125, %v1750_v21  ;;  %v1755_v26 = vadd.f32 %v1754_v22, %v1542_v23 }
 0xa50   : > { %v1852_v27 = vmul.f32 %v1850_v24, %v1850_v24  ;;  %v1851_v29 = vmul.f32 0.03125, %v1755_v26 }
 0xa52   : > { %v1853_v30 = vsub.f32 %v1851_v29, %v1852_v27 }
 0xa54   : > { %v1854_v8 = vadd.f32 1e-05, %v1853_v30 }
 0xa56   : > { %2516 = vrsqrt.f32 %v1854_v8 }
 0xa60   : > { %v2517_v34 = vpop.eup %2516 }
 0xa61   : > { %v1857_v37 = vmul.f32 %v2517_v34, %v1850_v24 }
 0xa63   : > { %v1865_v41 = vmul.f32 %v2139_v38, %v1857_v37 }
 0xa92   : > { %v1798_v31 = vpop.f32.mrb[32].mxu1 }
 0xa93   : > { %v1804_v32 = vadd.f32 %v1798_v31, %v1591_v61  ;;  %v2357_v33 = vpop.f32.mrb[33].mxu1 }
 0xa94   : > { %v1801_v35 = vpop.f32.mrb[34].mxu1 }
 0xa95   : > { %v2358_v36 = vpop.f32.mrb[35].mxu1  ;;  %v1892_v58 = vadd.f32 %v2141_v57, %v1804_v32 }
 0xa9a   : > { %v1843_v39 = vpop.f32.mrb[24].mxu1 }
 0xa9b   : > { %v1856_v40 = vmul.f32 %v2517_v34, %v1843_v39  ;;  %v2363_v42 = vpop.f32.mrb[25].mxu1 }
 0xa9c   : > { %v1846_v44 = vpop.f32.mrb[26].mxu1 }
 0xa9d   : > { %v1866_v45 = vsub.f32 %v1856_v40, %v1865_v41  ;;  %v2364_v46 = vpop.f32.mrb[27].mxu1 }
 0xa9f   : > { %v1874_v28 = vadd.f32 %v2140_v43, %v1866_v45 }
 0xaa1   : > { %v1876_v47 = vmul.f32 0.044715, %v1874_v28  ;;  %v1875_v53 = vmul.f32 0.5, %v1874_v28 }
 0xaa3   : > { %v1877_v48 = vmul.f32 %v1876_v47, %v1874_v28 }
 0xaa5   : > { %v1878_v49 = vmul.f32 %v1877_v48, %v1874_v28 }
 0xaa7   : > { %v1879_v50 = vadd.f32 %v1878_v49, %v1874_v28 }
 0xaa9   : > { %v1880_v51 = vmul.f32 0.7978846, %v1879_v50 }
 0xaab   : > { %2518 = vtanh.f32 %v1880_v51 }
 0xab5   : > { %v2519_v52 = vpop.eup %2518 }
 0xab6   : > { %v1882_v54 = vadd.f32 1.0, %v2519_v52 }
 0xab8   : > { %v1883_v25 = vmul.f32 %v1882_v54, %v1875_v53 }
 0xaba   : > { %v1884_v56 = vpack.c.bf16 %v1883_v25, %v1883_v25 }
 0xabc   : > { %2382 = vmatmul.mubr.bf16.vlgmr.msra.gmra.mrb[36].mxu0 %v1884_v56 }
 0xb8f   : > { %v1991_v59 = vpop.f32.mrb[36].mxu0 }
 0xb90   : > { %v1997_v60 = vadd.f32 %v1991_v59, %v1892_v58  ;;  %v2383_v61 = vpop.f32.mrb[37].mxu0 }
 0xb91   : > { %v1994_v62 = vpop.f32.mrb[38].mxu0 }
 0xb92   : > { %v2005_v63 = vadd.f32 %v2150_v55, %v1997_v60  ;;  %v2384_v0 = vpop.f32.mrb[39].mxu0 }
 0xb94   : > { %2006 = vst.msk [vmem:[%s458_s1] sm:$0xff] %vm489_vm0, %v2005_v63 }
 0xb95   : > { %2533 = shalt.err (!%p2530_p3)
}
 0xb96   : > { %s2534_s2 = scalar_lea.hbm %s3064_s26, 128  ;;  %s2538_s1 = scalar_lea.hbm %s3121_s14, 256 }
 0xb97   : > { %p2535_p4 = scmp.ne.s32.totalorder %s3064_s26, %s2534_s2  ;;  %p2539_p9 = scmp.lt.u32.totalorder %s3064_s26, %s3121_s14 }
 0xb98   : > { %p2540_p10 = scmp.lt.u32.totalorder %s2538_s1, %s2534_s2  ;;  %p2542_p12 = scmp.lt.u32.totalorder %s2534_s2, %s3064_s26 }
 0xb99   : > { %p2536_p7 = pnand %p2535_p4, %p2712_p5 }
 0xb9a   : > { %p2541_p11 = por %p2540_p10, %p2539_p9 }
 0xb9b   : > { %p2537_p8 = pneg %p2536_p7 }
 0xb9c   : > { %p2543_p13 = por %p2542_p12, %p2541_p11 }
 0xb9e   : > { %p2544_p0 = pnand %p2543_p13, %p2537_p8 }
 0xba0   : > { %2547 = shalt.err (!%p2544_p0)
}
 0xba1   : > { %2397 = dma.vmem_to_hbm [thread:$0]  (%p2712_p5), %s3066_s3, 128, %s3064_s26, %s2008_s17  }
 0xba2 PF: > { %p2403_p1 = scmp.ge.s32.totalorder %s2582_s16, 2  ;;  %s2033_s25 = sand.u32 1, %s2570_s29  }
 0xba3   : > { %s2034_s28 = scalar_lea.sflag [#allocation3], %s2033_s25 }
 0xba4   : > { %p2400_p2 = pnand %p2403_p1, %p2716_p6 }
 0xba6   : > { %2565 = dma.done.wait (!%p2400_p2), %s2034_s28, 128  }
 0xba7   : > { %2567 = vsyncadd (!%p2400_p2), %s2034_s28, 4294967168  ;;  %p24_p3 = scmp.ge.s32.totalorder %s2699_s19, 4   ;;  %s3132_s29 = smov %s2574_s30 }
 0xba8   : > { %s3133_s30 = smov %s2578_s15  ;;  %s3134_s15 = smov %s2710_s22 }
 0xba9   : > { %s3135_s16 = smov %s2699_s19  ;;  %26 = sbr.rel (!%p24_p3) target bundleno = 8 (0x8), region = 111 }
 0xbb0   :  { %2039 = vsyncpa [#allocation3], 1 }
 0xbb1   :  { %2041 = vsyncpa [#allocation3 + $0x1], 1 }

</bundles_post_ra>
